<compile_context>
chip_gen: v7x
topology: tpu7x:2x2x1
jax: 0.10.0
libtpu: 0.0.40
codegen_flags: <defaults>
</compile_context>

<pallas_src>
import jax
import jax.numpy as jnp
from jax.experimental import pallas as pl
from jax.experimental.pallas import tpu as pltpu

# ----------------------------- model dims ----------------------------------
GE_DIMS = [(597, 256), (256, 256), (256, 64)]            # geMLP
D_DIMS = [(56, 128), (128, 128), (128, 64)]              # dMLP
C_DIMS = [(128, 128), (128, 128), (128, 64), (64, 1)]    # combineMLP (last has no PReLU)


# ------------------------------ kernel --------------------------------------
def mlp_rawcgc_kernel(
    ge_ref, d_ref,
    gw1, gb1, gw2, gb2, gw3, gb3,
    dw1, db1, dw2, db2, dw3, db3,
    cw1_ge, cw1_d, cb1, cw2, cb2, cw3, cb3, cw4, cb4,
    alpha_ref,
    out_ref,
):
  def prelu(x, k):
    a = alpha_ref[k]                      # scalar slope from SMEM
    return jnp.where(x >= 0, x, a * x)

  def linear(x, w_ref, b_ref):
    # bf16 MXU matmul with f32 accumulation; bias add / PReLU stay in f32.
    return (
        jnp.dot(x.astype(jnp.bfloat16), w_ref[...],
                preferred_element_type=jnp.float32)
        + b_ref[...]
    )

  # geMLP branch: 597 -> 256 -> 256 -> 64  (PReLU after each)
  ge = ge_ref[...]
  ge = prelu(linear(ge, gw1, gb1), 0)
  ge = prelu(linear(ge, gw2, gb2), 1)
  ge = prelu(linear(ge, gw3, gb3), 2)

  # dMLP branch: 56 -> 128 -> 128 -> 64  (PReLU after each)
  d = d_ref[...]
  d = prelu(linear(d, dw1, db1), 3)
  d = prelu(linear(d, dw2, db2), 4)
  d = prelu(linear(d, dw3, db3), 5)

  # combineMLP layer 1: concat([ge, d], 1) @ cw1 == ge @ cw1[:64] + d @ cw1[64:]
  # (split on host => no cross-lane concat / XLU relayout inside the kernel)
  c = (jnp.dot(ge.astype(jnp.bfloat16), cw1_ge[...],
               preferred_element_type=jnp.float32)
       + jnp.dot(d.astype(jnp.bfloat16), cw1_d[...],
                 preferred_element_type=jnp.float32)
       + cb1[...])
  c = prelu(c, 6)
  c = prelu(linear(c, cw2, cb2), 7)
  c = prelu(linear(c, cw3, cb3), 8)

  # Final 64 -> 1 layer as a VPU multiply + lane reduction (avoids an N=1
  # MXU matmul); cw4 is the (1, 64) weight row in f32.
  out_ref[...] = jnp.sum(c * cw4[...], axis=1, keepdims=True) + cb4[...]


# ------------------------------ wrapper --------------------------------------
def _round_up(x, m):
  return ((x + m - 1) // m) * m


def prepare_kernel_params(params):
  """Rearrange / cast the f32 reference params into the kernel layout."""
  ws = params[0::2]
  bs = params[1::2]
  kp = []
  # geMLP + dMLP: 6 linear layers (bf16 weights, f32 biases).
  for i in range(6):
    kp += [ws[i].astype(jnp.bfloat16), bs[i]]
  # combineMLP layer 1: split the (128, out) weight along the concat axis.
  cw1, cb1 = ws[6], bs[6]
  kp += [cw1[:64, :].astype(jnp.bfloat16),
         cw1[64:, :].astype(jnp.bfloat16),
         cb1]
  # combineMLP layers 2, 3.
  for i in (7, 8):
    kp += [ws[i].astype(jnp.bfloat16), bs[i]]
  # Final 64 -> 1 layer: keep f32, reshape weight to a (1, 64) row for the
  # VPU lane reduction.
  kp += [ws[9].reshape(1, 64).astype(jnp.float32), bs[9]]
  return kp


def mlp_rawcgc(ge, d, params, alphas, *, tb=None):
  B = ge.shape[0]

  # Batch-tile selection: multiple of 8, capped at 512, and >= 2 grid steps
  # when the batch allows it (so v7x can shard the "parallel" axis over its
  # two TensorCores).  Intermediates are small, so f32/bf16 tiles of this
  # size fit comfortably in v5e/v6e/v7x VMEM.
  if tb is None:
    if B <= 16:
      tb = _round_up(max(B, 1), 8)              # single full-batch tile
    else:
      tb = min(512, _round_up(pl.cdiv(B, 2), 16))
  else:
    tb = _round_up(tb, 8)

  # Pad the batch to a multiple of tb (padded rows are sliced off at the end).
  Bp = _round_up(B, tb)
  ge = ge.astype(jnp.bfloat16)                  # halves input DMA bytes
  d = d.astype(jnp.bfloat16)
  if Bp != B:
    ge = jnp.pad(ge, ((0, Bp - B), (0, 0)))
    d = jnp.pad(d, ((0, Bp - B), (0, 0)))

  kparams = prepare_kernel_params(params)

  def row_spec(feat):
    return pl.BlockSpec((tb, feat), lambda i: (i, 0))

  def const_spec(arr):
    return pl.BlockSpec(arr.shape, lambda i: (0, 0))

  in_specs = [row_spec(ge.shape[1]), row_spec(d.shape[1])]
  in_specs += [const_spec(p) for p in kparams]
  in_specs += [pl.BlockSpec(memory_space=pltpu.MemorySpace.SMEM)]  # alphas

  # Cost estimate so XLA schedules surrounding ops sensibly.
  flops_per_row = 2 * (597 * 256 + 256 * 256 + 256 * 64
                       + 56 * 128 + 128 * 128 + 128 * 64
                       + 128 * 128 + 128 * 128 + 128 * 64 + 64)
  weight_bytes = sum(int(p.size) * p.dtype.itemsize for p in kparams)
  bytes_accessed = Bp * (597 + 56) * 2 + Bp * 4 + weight_bytes
  cost = pl.CostEstimate(flops=flops_per_row * Bp,
                         transcendentals=0,
                         bytes_accessed=int(bytes_accessed))

  # VMEM budget: double-buffered bf16 inputs + weight/bias buffers +
  # f32 intermediates + slack, clamped so it also fits v7x's 64 MiB VMEM.
  vmem_est = (2 * tb * (597 + 56) * 2       # double-buffered bf16 ge/d inputs
              + 2 * weight_bytes            # weight / bias buffers
              + 2 * tb * 128 * 4            # double-buffered (lane-padded) out
              + tb * 1600 * 4)              # live f32 intermediates
  vmem_limit = min(48 * 1024 * 1024, max(32 * 1024 * 1024, 2 * vmem_est))

  out = pl.pallas_call(
      mlp_rawcgc_kernel,
      out_shape=jax.ShapeDtypeStruct((Bp, 1), jnp.float32),
      grid=(Bp // tb,),
      in_specs=in_specs,
      out_specs=pl.BlockSpec((tb, 1), lambda i: (i, 0)),
      compiler_params=pltpu.CompilerParams(
          dimension_semantics=("parallel",),
          vmem_limit_bytes=int(vmem_limit)),
      cost_estimate=cost,
  )(ge, d, *kparams, alphas)
  return out[:B]


# --------------------------- param initialization ----------------------------
def init_linear(key, in_dim, out_dim):
  kw, kb = jax.random.split(key)
  bound = 1.0 / (in_dim ** 0.5)
  # W stored pre-transposed: (in_dim, out_dim)
  w = jax.random.uniform(kw, (in_dim, out_dim), jnp.float32, -bound, bound)
  b = jax.random.uniform(kb, (1, out_dim), jnp.float32, -bound, bound)
  return w, b


def init_params(key):
  params = []
  all_dims = GE_DIMS + D_DIMS + C_DIMS
  keys = jax.random.split(key, len(all_dims))
  for k, (din, dout) in zip(keys, all_dims):
    w, b = init_linear(k, din, dout)
    params += [w, b]
  alphas = jnp.full((9,), 0.25, dtype=jnp.float32)  # PReLU default init
  return params, alphas


# ------------------------------ reference (f32) -------------------------------
def reference(ge, d, params, alphas):
  def prelu(x, a):
    return jnp.where(x >= 0, x, a * x)

  ws = params[0::2]
  bs = params[1::2]
  x = ge
  for i in range(3):
    x = prelu(x @ ws[i] + bs[i], alphas[i])
  y = d
  for i in range(3):
    y = prelu(y @ ws[3 + i] + bs[3 + i], alphas[3 + i])
  c = jnp.concatenate([x, y], axis=1)
  for i in range(3):
    c = prelu(c @ ws[6 + i] + bs[6 + i], alphas[6 + i])
  return c @ ws[9] + bs[9]


# -------------------------------- main ----------------------------------------
if __name__ == "__main__":
  key = jax.random.PRNGKey(0)
  k_ge, k_d, k_p = jax.random.split(key, 3)

  B = 8
  ge_in = jax.random.normal(k_ge, (B, 597), jnp.float32)
  d_in = jax.random.normal(k_d, (B, 56), jnp.float32)

  params, alphas = init_params(k_p)

  out = mlp_rawcgc(ge_in, d_in, params, alphas)
  out = jax.block_until_ready(out)

  ref = reference(ge_in, d_in, params, alphas)
  assert out.shape == (B, 1)
  # bf16 matmul inputs (f32 accumulation) => loosened tolerance vs f32 ref.
  assert jnp.allclose(out, ref, atol=5e-2, rtol=5e-2), (out, ref)

  print("KERNEL_OK")
</pallas_src>

<mosaic_0001>
module attributes {stable_mosaic.version = 11 : i64} {
  func.func @mlp_rawcgc_kernel(%arg0: i32, %arg1: memref<8x597xbf16, #tpu.memory_space<vmem>>, %arg2: memref<8x56xbf16, #tpu.memory_space<vmem>>, %arg3: memref<597x256xbf16, #tpu.memory_space<vmem>>, %arg4: memref<1x256xf32, #tpu.memory_space<vmem>>, %arg5: memref<256x256xbf16, #tpu.memory_space<vmem>>, %arg6: memref<1x256xf32, #tpu.memory_space<vmem>>, %arg7: memref<256x64xbf16, #tpu.memory_space<vmem>>, %arg8: memref<1x64xf32, #tpu.memory_space<vmem>>, %arg9: memref<56x128xbf16, #tpu.memory_space<vmem>>, %arg10: memref<1x128xf32, #tpu.memory_space<vmem>>, %arg11: memref<128x128xbf16, #tpu.memory_space<vmem>>, %arg12: memref<1x128xf32, #tpu.memory_space<vmem>>, %arg13: memref<128x64xbf16, #tpu.memory_space<vmem>>, %arg14: memref<1x64xf32, #tpu.memory_space<vmem>>, %arg15: memref<64x128xbf16, #tpu.memory_space<vmem>>, %arg16: memref<64x128xbf16, #tpu.memory_space<vmem>>, %arg17: memref<1x128xf32, #tpu.memory_space<vmem>>, %arg18: memref<128x128xbf16, #tpu.memory_space<vmem>>, %arg19: memref<1x128xf32, #tpu.memory_space<vmem>>, %arg20: memref<128x64xbf16, #tpu.memory_space<vmem>>, %arg21: memref<1x64xf32, #tpu.memory_space<vmem>>, %arg22: memref<1x64xf32, #tpu.memory_space<vmem>>, %arg23: memref<1x1xf32, #tpu.memory_space<vmem>>, %arg24: memref<9xf32, #tpu.memory_space<smem>>, %arg25: memref<8x1xf32, #tpu.memory_space<vmem>>) attributes {dimension_semantics = [#tpu.dimension_semantics<parallel>], iteration_bounds = array<i64: 1>, scalar_prefetch = 0 : i64, scratch_operands = 0 : i64, tpu.core_type = #tpu.core_type<tc>, window_params = [{transform_indices = @transform_0, window_bounds = array<i64: 8, 597>}, {transform_indices = @transform_1, window_bounds = array<i64: 8, 56>}, {pipeline_mode = #tpu.pipeline_mode<synchronous>, transform_indices = @transform_2, window_bounds = array<i64: 597, 256>}, {pipeline_mode = #tpu.pipeline_mode<synchronous>, transform_indices = @transform_3, window_bounds = array<i64: 1, 256>}, {pipeline_mode = #tpu.pipeline_mode<synchronous>, transform_indices = @transform_4, window_bounds = array<i64: 256, 256>}, {pipeline_mode = #tpu.pipeline_mode<synchronous>, transform_indices = @transform_5, window_bounds = array<i64: 1, 256>}, {pipeline_mode = #tpu.pipeline_mode<synchronous>, transform_indices = @transform_6, window_bounds = array<i64: 256, 64>}, {pipeline_mode = #tpu.pipeline_mode<synchronous>, transform_indices = @transform_7, window_bounds = array<i64: 1, 64>}, {pipeline_mode = #tpu.pipeline_mode<synchronous>, transform_indices = @transform_8, window_bounds = array<i64: 56, 128>}, {pipeline_mode = #tpu.pipeline_mode<synchronous>, transform_indices = @transform_9, window_bounds = array<i64: 1, 128>}, {pipeline_mode = #tpu.pipeline_mode<synchronous>, transform_indices = @transform_10, window_bounds = array<i64: 128, 128>}, {pipeline_mode = #tpu.pipeline_mode<synchronous>, transform_indices = @transform_11, window_bounds = array<i64: 1, 128>}, {pipeline_mode = #tpu.pipeline_mode<synchronous>, transform_indices = @transform_12, window_bounds = array<i64: 128, 64>}, {pipeline_mode = #tpu.pipeline_mode<synchronous>, transform_indices = @transform_13, window_bounds = array<i64: 1, 64>}, {pipeline_mode = #tpu.pipeline_mode<synchronous>, transform_indices = @transform_14, window_bounds = array<i64: 64, 128>}, {pipeline_mode = #tpu.pipeline_mode<synchronous>, transform_indices = @transform_15, window_bounds = array<i64: 64, 128>}, {pipeline_mode = #tpu.pipeline_mode<synchronous>, transform_indices = @transform_16, window_bounds = array<i64: 1, 128>}, {pipeline_mode = #tpu.pipeline_mode<synchronous>, transform_indices = @transform_17, window_bounds = array<i64: 128, 128>}, {pipeline_mode = #tpu.pipeline_mode<synchronous>, transform_indices = @transform_18, window_bounds = array<i64: 1, 128>}, {pipeline_mode = #tpu.pipeline_mode<synchronous>, transform_indices = @transform_19, window_bounds = array<i64: 128, 64>}, {pipeline_mode = #tpu.pipeline_mode<synchronous>, transform_indices = @transform_20, window_bounds = array<i64: 1, 64>}, {pipeline_mode = #tpu.pipeline_mode<synchronous>, transform_indices = @transform_21, window_bounds = array<i64: 1, 64>}, {pipeline_mode = #tpu.pipeline_mode<synchronous>, transform_indices = @transform_22, window_bounds = array<i64: 1, 1>}, {transform_indices = @transform_23, window_bounds = array<i64: 9>}, {transform_indices = @transform_24, window_bounds = array<i64: 8, 1>}]} {
    %c0 = arith.constant 0 : index
    %c0_0 = arith.constant 0 : index
    %0 = vector.load %arg1[%c0, %c0_0] : memref<8x597xbf16, #tpu.memory_space<vmem>>, vector<8x597xbf16>
    %c0_1 = arith.constant 0 : index
    %c0_2 = arith.constant 0 : index
    %1 = vector.load %arg3[%c0_1, %c0_2] : memref<597x256xbf16, #tpu.memory_space<vmem>>, vector<597x256xbf16>
    %cst = arith.constant dense<0.000000e+00> : vector<8x256xf32>
    %2 = tpu.matmul %0, %1, %cst {dimension_numbers = #tpu.dot_dimension_numbers<[1], [0], [0], [1], [0, 0, 1, 1], [], []>} : vector<8x597xbf16>, vector<597x256xbf16>, vector<8x256xf32> -> vector<8x256xf32>
    %c0_3 = arith.constant 0 : index
    %c0_4 = arith.constant 0 : index
    %3 = vector.load %arg4[%c0_3, %c0_4] : memref<1x256xf32, #tpu.memory_space<vmem>>, vector<1x256xf32>
    %4 = vector.broadcast %3 : vector<1x256xf32> to vector<8x256xf32>
    %5 = arith.addf %2, %4 : vector<8x256xf32>
    %c0_5 = arith.constant 0 : index
    %6 = memref.load %arg24[%c0_5] : memref<9xf32, #tpu.memory_space<smem>>
    %cst_6 = arith.constant 0.000000e+00 : f32
    %7 = vector.broadcast %cst_6 : f32 to vector<8x256xf32>
    %8 = arith.cmpf oge, %5, %7 : vector<8x256xf32>
    %9 = vector.broadcast %6 : f32 to vector<8x256xf32>
    %10 = arith.mulf %9, %5 : vector<8x256xf32>
    %11 = arith.select %8, %5, %10 : vector<8x256xi1>, vector<8x256xf32>
    %12 = arith.truncf %11 : vector<8x256xf32> to vector<8x256xbf16>
    %c0_7 = arith.constant 0 : index
    %c0_8 = arith.constant 0 : index
    %13 = vector.load %arg5[%c0_7, %c0_8] : memref<256x256xbf16, #tpu.memory_space<vmem>>, vector<256x256xbf16>
    %cst_9 = arith.constant dense<0.000000e+00> : vector<8x256xf32>
    %14 = tpu.matmul %12, %13, %cst_9 {dimension_numbers = #tpu.dot_dimension_numbers<[1], [0], [0], [1], [0, 0, 1, 1], [], []>} : vector<8x256xbf16>, vector<256x256xbf16>, vector<8x256xf32> -> vector<8x256xf32>
    %c0_10 = arith.constant 0 : index
    %c0_11 = arith.constant 0 : index
    %15 = vector.load %arg6[%c0_10, %c0_11] : memref<1x256xf32, #tpu.memory_space<vmem>>, vector<1x256xf32>
    %16 = vector.broadcast %15 : vector<1x256xf32> to vector<8x256xf32>
    %17 = arith.addf %14, %16 : vector<8x256xf32>
    %c1 = arith.constant 1 : index
    %18 = memref.load %arg24[%c1] : memref<9xf32, #tpu.memory_space<smem>>
    %cst_12 = arith.constant 0.000000e+00 : f32
    %19 = vector.broadcast %cst_12 : f32 to vector<8x256xf32>
    %20 = arith.cmpf oge, %17, %19 : vector<8x256xf32>
    %21 = vector.broadcast %18 : f32 to vector<8x256xf32>
    %22 = arith.mulf %21, %17 : vector<8x256xf32>
    %23 = arith.select %20, %17, %22 : vector<8x256xi1>, vector<8x256xf32>
    %24 = arith.truncf %23 : vector<8x256xf32> to vector<8x256xbf16>
    %c0_13 = arith.constant 0 : index
    %c0_14 = arith.constant 0 : index
    %25 = vector.load %arg7[%c0_13, %c0_14] : memref<256x64xbf16, #tpu.memory_space<vmem>>, vector<256x64xbf16>
    %cst_15 = arith.constant dense<0.000000e+00> : vector<8x64xf32>
    %26 = tpu.matmul %24, %25, %cst_15 {dimension_numbers = #tpu.dot_dimension_numbers<[1], [0], [0], [1], [0, 0, 1, 1], [], []>} : vector<8x256xbf16>, vector<256x64xbf16>, vector<8x64xf32> -> vector<8x64xf32>
    %c0_16 = arith.constant 0 : index
    %c0_17 = arith.constant 0 : index
    %27 = vector.load %arg8[%c0_16, %c0_17] : memref<1x64xf32, #tpu.memory_space<vmem>>, vector<1x64xf32>
    %28 = vector.broadcast %27 : vector<1x64xf32> to vector<8x64xf32>
    %29 = arith.addf %26, %28 : vector<8x64xf32>
    %c2 = arith.constant 2 : index
    %30 = memref.load %arg24[%c2] : memref<9xf32, #tpu.memory_space<smem>>
    %cst_18 = arith.constant 0.000000e+00 : f32
    %31 = vector.broadcast %cst_18 : f32 to vector<8x64xf32>
    %32 = arith.cmpf oge, %29, %31 : vector<8x64xf32>
    %33 = vector.broadcast %30 : f32 to vector<8x64xf32>
    %34 = arith.mulf %33, %29 : vector<8x64xf32>
    %35 = arith.select %32, %29, %34 : vector<8x64xi1>, vector<8x64xf32>
    %c0_19 = arith.constant 0 : index
    %c0_20 = arith.constant 0 : index
    %36 = vector.load %arg2[%c0_19, %c0_20] : memref<8x56xbf16, #tpu.memory_space<vmem>>, vector<8x56xbf16>
    %c0_21 = arith.constant 0 : index
    %c0_22 = arith.constant 0 : index
    %37 = vector.load %arg9[%c0_21, %c0_22] : memref<56x128xbf16, #tpu.memory_space<vmem>>, vector<56x128xbf16>
    %cst_23 = arith.constant dense<0.000000e+00> : vector<8x128xf32>
    %38 = tpu.matmul %36, %37, %cst_23 {dimension_numbers = #tpu.dot_dimension_numbers<[1], [0], [0], [1], [0, 0, 1, 1], [], []>} : vector<8x56xbf16>, vector<56x128xbf16>, vector<8x128xf32> -> vector<8x128xf32>
    %c0_24 = arith.constant 0 : index
    %c0_25 = arith.constant 0 : index
    %39 = vector.load %arg10[%c0_24, %c0_25] : memref<1x128xf32, #tpu.memory_space<vmem>>, vector<1x128xf32>
    %40 = vector.broadcast %39 : vector<1x128xf32> to vector<8x128xf32>
    %41 = arith.addf %38, %40 : vector<8x128xf32>
    %c3 = arith.constant 3 : index
    %42 = memref.load %arg24[%c3] : memref<9xf32, #tpu.memory_space<smem>>
    %cst_26 = arith.constant 0.000000e+00 : f32
    %43 = vector.broadcast %cst_26 : f32 to vector<8x128xf32>
    %44 = arith.cmpf oge, %41, %43 : vector<8x128xf32>
    %45 = vector.broadcast %42 : f32 to vector<8x128xf32>
    %46 = arith.mulf %45, %41 : vector<8x128xf32>
    %47 = arith.select %44, %41, %46 : vector<8x128xi1>, vector<8x128xf32>
    %48 = arith.truncf %47 : vector<8x128xf32> to vector<8x128xbf16>
    %c0_27 = arith.constant 0 : index
    %c0_28 = arith.constant 0 : index
    %49 = vector.load %arg11[%c0_27, %c0_28] : memref<128x128xbf16, #tpu.memory_space<vmem>>, vector<128x128xbf16>
    %cst_29 = arith.constant dense<0.000000e+00> : vector<8x128xf32>
    %50 = tpu.matmul %48, %49, %cst_29 {dimension_numbers = #tpu.dot_dimension_numbers<[1], [0], [0], [1], [0, 0, 1, 1], [], []>} : vector<8x128xbf16>, vector<128x128xbf16>, vector<8x128xf32> -> vector<8x128xf32>
    %c0_30 = arith.constant 0 : index
    %c0_31 = arith.constant 0 : index
    %51 = vector.load %arg12[%c0_30, %c0_31] : memref<1x128xf32, #tpu.memory_space<vmem>>, vector<1x128xf32>
    %52 = vector.broadcast %51 : vector<1x128xf32> to vector<8x128xf32>
    %53 = arith.addf %50, %52 : vector<8x128xf32>
    %c4 = arith.constant 4 : index
    %54 = memref.load %arg24[%c4] : memref<9xf32, #tpu.memory_space<smem>>
    %cst_32 = arith.constant 0.000000e+00 : f32
    %55 = vector.broadcast %cst_32 : f32 to vector<8x128xf32>
    %56 = arith.cmpf oge, %53, %55 : vector<8x128xf32>
    %57 = vector.broadcast %54 : f32 to vector<8x128xf32>
    %58 = arith.mulf %57, %53 : vector<8x128xf32>
    %59 = arith.select %56, %53, %58 : vector<8x128xi1>, vector<8x128xf32>
    %60 = arith.truncf %59 : vector<8x128xf32> to vector<8x128xbf16>
    %c0_33 = arith.constant 0 : index
    %c0_34 = arith.constant 0 : index
    %61 = vector.load %arg13[%c0_33, %c0_34] : memref<128x64xbf16, #tpu.memory_space<vmem>>, vector<128x64xbf16>
    %cst_35 = arith.constant dense<0.000000e+00> : vector<8x64xf32>
    %62 = tpu.matmul %60, %61, %cst_35 {dimension_numbers = #tpu.dot_dimension_numbers<[1], [0], [0], [1], [0, 0, 1, 1], [], []>} : vector<8x128xbf16>, vector<128x64xbf16>, vector<8x64xf32> -> vector<8x64xf32>
    %c0_36 = arith.constant 0 : index
    %c0_37 = arith.constant 0 : index
    %63 = vector.load %arg14[%c0_36, %c0_37] : memref<1x64xf32, #tpu.memory_space<vmem>>, vector<1x64xf32>
    %64 = vector.broadcast %63 : vector<1x64xf32> to vector<8x64xf32>
    %65 = arith.addf %62, %64 : vector<8x64xf32>
    %c5 = arith.constant 5 : index
    %66 = memref.load %arg24[%c5] : memref<9xf32, #tpu.memory_space<smem>>
    %cst_38 = arith.constant 0.000000e+00 : f32
    %67 = vector.broadcast %cst_38 : f32 to vector<8x64xf32>
    %68 = arith.cmpf oge, %65, %67 : vector<8x64xf32>
    %69 = vector.broadcast %66 : f32 to vector<8x64xf32>
    %70 = arith.mulf %69, %65 : vector<8x64xf32>
    %71 = arith.select %68, %65, %70 : vector<8x64xi1>, vector<8x64xf32>
    %72 = arith.truncf %35 : vector<8x64xf32> to vector<8x64xbf16>
    %c0_39 = arith.constant 0 : index
    %c0_40 = arith.constant 0 : index
    %73 = vector.load %arg15[%c0_39, %c0_40] : memref<64x128xbf16, #tpu.memory_space<vmem>>, vector<64x128xbf16>
    %cst_41 = arith.constant dense<0.000000e+00> : vector<8x128xf32>
    %74 = tpu.matmul %72, %73, %cst_41 {dimension_numbers = #tpu.dot_dimension_numbers<[1], [0], [0], [1], [0, 0, 1, 1], [], []>} : vector<8x64xbf16>, vector<64x128xbf16>, vector<8x128xf32> -> vector<8x128xf32>
    %75 = arith.truncf %71 : vector<8x64xf32> to vector<8x64xbf16>
    %c0_42 = arith.constant 0 : index
    %c0_43 = arith.constant 0 : index
    %76 = vector.load %arg16[%c0_42, %c0_43] : memref<64x128xbf16, #tpu.memory_space<vmem>>, vector<64x128xbf16>
    %cst_44 = arith.constant dense<0.000000e+00> : vector<8x128xf32>
    %77 = tpu.matmul %75, %76, %cst_44 {dimension_numbers = #tpu.dot_dimension_numbers<[1], [0], [0], [1], [0, 0, 1, 1], [], []>} : vector<8x64xbf16>, vector<64x128xbf16>, vector<8x128xf32> -> vector<8x128xf32>
    %78 = arith.addf %74, %77 : vector<8x128xf32>
    %c0_45 = arith.constant 0 : index
    %c0_46 = arith.constant 0 : index
    %79 = vector.load %arg17[%c0_45, %c0_46] : memref<1x128xf32, #tpu.memory_space<vmem>>, vector<1x128xf32>
    %80 = vector.broadcast %79 : vector<1x128xf32> to vector<8x128xf32>
    %81 = arith.addf %78, %80 : vector<8x128xf32>
    %c6 = arith.constant 6 : index
    %82 = memref.load %arg24[%c6] : memref<9xf32, #tpu.memory_space<smem>>
    %cst_47 = arith.constant 0.000000e+00 : f32
    %83 = vector.broadcast %cst_47 : f32 to vector<8x128xf32>
    %84 = arith.cmpf oge, %81, %83 : vector<8x128xf32>
    %85 = vector.broadcast %82 : f32 to vector<8x128xf32>
    %86 = arith.mulf %85, %81 : vector<8x128xf32>
    %87 = arith.select %84, %81, %86 : vector<8x128xi1>, vector<8x128xf32>
    %88 = arith.truncf %87 : vector<8x128xf32> to vector<8x128xbf16>
    %c0_48 = arith.constant 0 : index
    %c0_49 = arith.constant 0 : index
    %89 = vector.load %arg18[%c0_48, %c0_49] : memref<128x128xbf16, #tpu.memory_space<vmem>>, vector<128x128xbf16>
    %cst_50 = arith.constant dense<0.000000e+00> : vector<8x128xf32>
    %90 = tpu.matmul %88, %89, %cst_50 {dimension_numbers = #tpu.dot_dimension_numbers<[1], [0], [0], [1], [0, 0, 1, 1], [], []>} : vector<8x128xbf16>, vector<128x128xbf16>, vector<8x128xf32> -> vector<8x128xf32>
    %c0_51 = arith.constant 0 : index
    %c0_52 = arith.constant 0 : index
    %91 = vector.load %arg19[%c0_51, %c0_52] : memref<1x128xf32, #tpu.memory_space<vmem>>, vector<1x128xf32>
    %92 = vector.broadcast %91 : vector<1x128xf32> to vector<8x128xf32>
    %93 = arith.addf %90, %92 : vector<8x128xf32>
    %c7 = arith.constant 7 : index
    %94 = memref.load %arg24[%c7] : memref<9xf32, #tpu.memory_space<smem>>
    %cst_53 = arith.constant 0.000000e+00 : f32
    %95 = vector.broadcast %cst_53 : f32 to vector<8x128xf32>
    %96 = arith.cmpf oge, %93, %95 : vector<8x128xf32>
    %97 = vector.broadcast %94 : f32 to vector<8x128xf32>
    %98 = arith.mulf %97, %93 : vector<8x128xf32>
    %99 = arith.select %96, %93, %98 : vector<8x128xi1>, vector<8x128xf32>
    %100 = arith.truncf %99 : vector<8x128xf32> to vector<8x128xbf16>
    %c0_54 = arith.constant 0 : index
    %c0_55 = arith.constant 0 : index
    %101 = vector.load %arg20[%c0_54, %c0_55] : memref<128x64xbf16, #tpu.memory_space<vmem>>, vector<128x64xbf16>
    %cst_56 = arith.constant dense<0.000000e+00> : vector<8x64xf32>
    %102 = tpu.matmul %100, %101, %cst_56 {dimension_numbers = #tpu.dot_dimension_numbers<[1], [0], [0], [1], [0, 0, 1, 1], [], []>} : vector<8x128xbf16>, vector<128x64xbf16>, vector<8x64xf32> -> vector<8x64xf32>
    %c0_57 = arith.constant 0 : index
    %c0_58 = arith.constant 0 : index
    %103 = vector.load %arg21[%c0_57, %c0_58] : memref<1x64xf32, #tpu.memory_space<vmem>>, vector<1x64xf32>
    %104 = vector.broadcast %103 : vector<1x64xf32> to vector<8x64xf32>
    %105 = arith.addf %102, %104 : vector<8x64xf32>
    %c8 = arith.constant 8 : index
    %106 = memref.load %arg24[%c8] : memref<9xf32, #tpu.memory_space<smem>>
    %cst_59 = arith.constant 0.000000e+00 : f32
    %107 = vector.broadcast %cst_59 : f32 to vector<8x64xf32>
    %108 = arith.cmpf oge, %105, %107 : vector<8x64xf32>
    %109 = vector.broadcast %106 : f32 to vector<8x64xf32>
    %110 = arith.mulf %109, %105 : vector<8x64xf32>
    %111 = arith.select %108, %105, %110 : vector<8x64xi1>, vector<8x64xf32>
    %c0_60 = arith.constant 0 : index
    %c0_61 = arith.constant 0 : index
    %112 = vector.load %arg22[%c0_60, %c0_61] : memref<1x64xf32, #tpu.memory_space<vmem>>, vector<1x64xf32>
    %113 = vector.broadcast %112 : vector<1x64xf32> to vector<8x64xf32>
    %114 = arith.mulf %111, %113 : vector<8x64xf32>
    %cst_62 = arith.constant dense<0.000000e+00> : vector<8xf32>
    %115 = vector.multi_reduction <add>, %114, %cst_62 [1] : vector<8x64xf32> to vector<8xf32>
    %116 = vector.shape_cast %115 : vector<8xf32> to vector<8x1xf32>
    %c0_63 = arith.constant 0 : index
    %c0_64 = arith.constant 0 : index
    %117 = vector.load %arg23[%c0_63, %c0_64] : memref<1x1xf32, #tpu.memory_space<vmem>>, vector<1x1xf32>
    %118 = vector.broadcast %117 : vector<1x1xf32> to vector<8x1xf32>
    %119 = arith.addf %116, %118 : vector<8x1xf32>
    %c0_65 = arith.constant 0 : index
    %c0_66 = arith.constant 0 : index
    %120 = vector.load %arg25[%c0_65, %c0_66] : memref<8x1xf32, #tpu.memory_space<vmem>>, vector<8x1xf32>
    tpu.vector_store %arg25[%c0_65, %c0_66], %119 {strides = array<i32>} : memref<8x1xf32, #tpu.memory_space<vmem>>, vector<8x1xf32>,
    return
  }
  func.func @transform_0(%arg0: i32) -> (i32, i32) {
    %c0_i32 = arith.constant 0 : i32
    %c0_i32_0 = arith.constant 0 : i32
    return %arg0, %c0_i32 : i32, i32
  }
  func.func @transform_1(%arg0: i32) -> (i32, i32) {
    %c0_i32 = arith.constant 0 : i32
    %c0_i32_0 = arith.constant 0 : i32
    return %arg0, %c0_i32 : i32, i32
  }
  func.func @transform_2(%arg0: i32) -> (i32, i32) {
    %c0_i32 = arith.constant 0 : i32
    %c0_i32_0 = arith.constant 0 : i32
    %c0_i32_1 = arith.constant 0 : i32
    return %c0_i32, %c0_i32_0 : i32, i32
  }
  func.func @transform_3(%arg0: i32) -> (i32, i32) {
    %c0_i32 = arith.constant 0 : i32
    %c0_i32_0 = arith.constant 0 : i32
    %c0_i32_1 = arith.constant 0 : i32
    return %c0_i32, %c0_i32_0 : i32, i32
  }
  func.func @transform_4(%arg0: i32) -> (i32, i32) {
    %c0_i32 = arith.constant 0 : i32
    %c0_i32_0 = arith.constant 0 : i32
    %c0_i32_1 = arith.constant 0 : i32
    return %c0_i32, %c0_i32_0 : i32, i32
  }
  func.func @transform_5(%arg0: i32) -> (i32, i32) {
    %c0_i32 = arith.constant 0 : i32
    %c0_i32_0 = arith.constant 0 : i32
    %c0_i32_1 = arith.constant 0 : i32
    return %c0_i32, %c0_i32_0 : i32, i32
  }
  func.func @transform_6(%arg0: i32) -> (i32, i32) {
    %c0_i32 = arith.constant 0 : i32
    %c0_i32_0 = arith.constant 0 : i32
    %c0_i32_1 = arith.constant 0 : i32
    return %c0_i32, %c0_i32_0 : i32, i32
  }
  func.func @transform_7(%arg0: i32) -> (i32, i32) {
    %c0_i32 = arith.constant 0 : i32
    %c0_i32_0 = arith.constant 0 : i32
    %c0_i32_1 = arith.constant 0 : i32
    return %c0_i32, %c0_i32_0 : i32, i32
  }
  func.func @transform_8(%arg0: i32) -> (i32, i32) {
    %c0_i32 = arith.constant 0 : i32
    %c0_i32_0 = arith.constant 0 : i32
    %c0_i32_1 = arith.constant 0 : i32
    return %c0_i32, %c0_i32_0 : i32, i32
  }
  func.func @transform_9(%arg0: i32) -> (i32, i32) {
    %c0_i32 = arith.constant 0 : i32
    %c0_i32_0 = arith.constant 0 : i32
    %c0_i32_1 = arith.constant 0 : i32
    return %c0_i32, %c0_i32_0 : i32, i32
  }
  func.func @transform_10(%arg0: i32) -> (i32, i32) {
    %c0_i32 = arith.constant 0 : i32
    %c0_i32_0 = arith.constant 0 : i32
    %c0_i32_1 = arith.constant 0 : i32
    return %c0_i32, %c0_i32_0 : i32, i32
  }
  func.func @transform_11(%arg0: i32) -> (i32, i32) {
    %c0_i32 = arith.constant 0 : i32
    %c0_i32_0 = arith.constant 0 : i32
    %c0_i32_1 = arith.constant 0 : i32
    return %c0_i32, %c0_i32_0 : i32, i32
  }
  func.func @transform_12(%arg0: i32) -> (i32, i32) {
    %c0_i32 = arith.constant 0 : i32
    %c0_i32_0 = arith.constant 0 : i32
    %c0_i32_1 = arith.constant 0 : i32
    return %c0_i32, %c0_i32_0 : i32, i32
  }
  func.func @transform_13(%arg0: i32) -> (i32, i32) {
    %c0_i32 = arith.constant 0 : i32
    %c0_i32_0 = arith.constant 0 : i32
    %c0_i32_1 = arith.constant 0 : i32
    return %c0_i32, %c0_i32_0 : i32, i32
  }
  func.func @transform_14(%arg0: i32) -> (i32, i32) {
    %c0_i32 = arith.constant 0 : i32
    %c0_i32_0 = arith.constant 0 : i32
    %c0_i32_1 = arith.constant 0 : i32
    return %c0_i32, %c0_i32_0 : i32, i32
  }
  func.func @transform_15(%arg0: i32) -> (i32, i32) {
    %c0_i32 = arith.constant 0 : i32
    %c0_i32_0 = arith.constant 0 : i32
    %c0_i32_1 = arith.constant 0 : i32
    return %c0_i32, %c0_i32_0 : i32, i32
  }
  func.func @transform_16(%arg0: i32) -> (i32, i32) {
    %c0_i32 = arith.constant 0 : i32
    %c0_i32_0 = arith.constant 0 : i32
    %c0_i32_1 = arith.constant 0 : i32
    return %c0_i32, %c0_i32_0 : i32, i32
  }
  func.func @transform_17(%arg0: i32) -> (i32, i32) {
    %c0_i32 = arith.constant 0 : i32
    %c0_i32_0 = arith.constant 0 : i32
    %c0_i32_1 = arith.constant 0 : i32
    return %c0_i32, %c0_i32_0 : i32, i32
  }
  func.func @transform_18(%arg0: i32) -> (i32, i32) {
    %c0_i32 = arith.constant 0 : i32
    %c0_i32_0 = arith.constant 0 : i32
    %c0_i32_1 = arith.constant 0 : i32
    return %c0_i32, %c0_i32_0 : i32, i32
  }
  func.func @transform_19(%arg0: i32) -> (i32, i32) {
    %c0_i32 = arith.constant 0 : i32
    %c0_i32_0 = arith.constant 0 : i32
    %c0_i32_1 = arith.constant 0 : i32
    return %c0_i32, %c0_i32_0 : i32, i32
  }
  func.func @transform_20(%arg0: i32) -> (i32, i32) {
    %c0_i32 = arith.constant 0 : i32
    %c0_i32_0 = arith.constant 0 : i32
    %c0_i32_1 = arith.constant 0 : i32
    return %c0_i32, %c0_i32_0 : i32, i32
  }
  func.func @transform_21(%arg0: i32) -> (i32, i32) {
    %c0_i32 = arith.constant 0 : i32
    %c0_i32_0 = arith.constant 0 : i32
    %c0_i32_1 = arith.constant 0 : i32
    return %c0_i32, %c0_i32_0 : i32, i32
  }
  func.func @transform_22(%arg0: i32) -> (i32, i32) {
    %c0_i32 = arith.constant 0 : i32
    %c0_i32_0 = arith.constant 0 : i32
    %c0_i32_1 = arith.constant 0 : i32
    return %c0_i32, %c0_i32_0 : i32, i32
  }
  func.func @transform_23(%arg0: i32) -> i32 {
    %c0_i32 = arith.constant 0 : i32
    %c0_i32_0 = arith.constant 0 : i32
    return %c0_i32 : i32
  }
  func.func @transform_24(%arg0: i32) -> (i32, i32) {
    %c0_i32 = arith.constant 0 : i32
    %c0_i32_0 = arith.constant 0 : i32
    return %arg0, %c0_i32 : i32, i32
  }
}

</mosaic_0001>

<bundles_post_ra>
// kernel: tpu_custom_call.1
= control target key start
LH: loop header
LB: loop body
LE: loop exit
PB: predicated region body
PF: predicated region fallthrough
CT: control target
= control target key end

     0   :  { %s3676_s0 = inlined_call_operand.hbm [shape: bf16[8,597], index: 0, kind: input, shape index: {}]   ;;  %s3677_s1 = inlined_call_operand.vmem [shape: bf16[8,56], index: 1, kind: input, shape index: {}]   ;;  %s3678_s2 = inlined_call_operand.hbm [shape: bf16[597,256], index: 2, kind: input, shape index: {}]   ;;  %s3679_s3 = inlined_call_operand.hbm [shape: f32[1,256], index: 3, kind: input, shape index: {}]   ;;  %s3680_s4 = inlined_call_operand.vmem [shape: bf16[256,256], index: 4, kind: input, shape index: {}]   ;;  %s3681_s5 = inlined_call_operand.hbm [shape: f32[1,256], index: 5, kind: input, shape index: {}]   ;;  %s3682_s6 = inlined_call_operand.vmem [shape: bf16[256,64], index: 6, kind: input, shape index: {}]   ;;  %s3683_s7 = inlined_call_operand.hbm [shape: f32[1,64], index: 7, kind: input, shape index: {}]   ;;  %s3684_s8 = inlined_call_operand.hbm [shape: bf16[56,128], index: 8, kind: input, shape index: {}]   ;;  %s3685_s9 = inlined_call_operand.hbm [shape: f32[1,128], index: 9, kind: input, shape index: {}]   ;;  %s3686_s10 = inlined_call_operand.vmem [shape: bf16[128,128], index: 10, kind: input, shape index: {}]   ;;  %s3687_s11 = inlined_call_operand.hbm [shape: f32[1,128], index: 11, kind: input, shape index: {}]   ;;  %s3688_s12 = inlined_call_operand.vmem [shape: bf16[128,64], index: 12, kind: input, shape index: {}]   ;;  %s3689_s13 = inlined_call_operand.hbm [shape: f32[1,64], index: 13, kind: input, shape index: {}]   ;;  %s3690_s14 = inlined_call_operand.hbm [shape: bf16[64,128], index: 14, kind: input, shape index: {}]   ;;  %s3691_s15 = inlined_call_operand.hbm [shape: bf16[64,128], index: 15, kind: input, shape index: {}]   ;;  %s3692_s16 = inlined_call_operand.hbm [shape: f32[1,128], index: 16, kind: input, shape index: {}]   ;;  %s3693_s17 = inlined_call_operand.vmem [shape: bf16[128,128], index: 17, kind: input, shape index: {}]   ;;  %s3694_s18 = inlined_call_operand.hbm [shape: f32[1,128], index: 18, kind: input, shape index: {}]   ;;  %s3695_s19 = inlined_call_operand.vmem [shape: bf16[128,64], index: 19, kind: input, shape index: {}]   ;;  %s3696_s20 = inlined_call_operand.vmem [shape: f32[1,64], index: 20, kind: input, shape index: {}]   ;;  %s3697_s21 = inlined_call_operand.vmem [shape: f32[1,64], index: 21, kind: input, shape index: {}]   ;;  %s3698_s22 = inlined_call_operand.<no memory space> [shape: f32[1,1], index: 22, kind: input, shape index: {}]   ;;  %s3699_s23 = inlined_call_operand.vmem [shape: f32[9], index: 23, kind: input, shape index: {}]   ;;  %s3700_s24 = inlined_call_operand.vmem [shape: f32[8,1], index: 24, kind: output, shape index: {}]  }
   0x1   :  { %3709 = sst [smem:[#allocation33_spill]] %s3676_s0  ;;  %v29_v0 = vstv %s3698_s22 }
   0x2   :  { %3710 = sst [smem:[#allocation34_spill]] %s3677_s1  ;;  %30 = vst [vmem:[#allocation2] sm:$0x1] %v29_v0 }
   0x3   :  { %3711 = sst [smem:[#allocation35_spill]] %s3678_s2 }
   0x4   :  { %3712 = sst [smem:[#allocation36_spill]] %s3679_s3 }
   0x5   :  { %3713 = sst [smem:[#allocation37_spill]] %s3680_s4 }
   0x6   :  { %3714 = sst [smem:[#allocation38_spill]] %s3681_s5 }
   0x7   :  { %3715 = sst [smem:[#allocation39_spill]] %s3682_s6 }
   0x8   :  { %3716 = sst [smem:[#allocation40_spill]] %s3683_s7 }
   0x9   :  { %3717 = sst [smem:[#allocation41_spill]] %s3684_s8 }
   0xa   :  { %3718 = sst [smem:[#allocation42_spill]] %s3697_s21 }
   0xb   :  { %3719 = sst [smem:[#allocation43_spill]] %s3700_s24 }
   0xc   :  { %31 = vsyncpa [#allocation4], 0 }
   0xd   :  { %32 = vsyncpa [#allocation7], 0 }
   0xe   :  { %33 = vsyncpa [#allocation10], 0 }
   0xf   :  { %34 = vsyncpa [#allocation13], 0 }
  0x10   :  { %35 = vsyncpa [#allocation16], 0 }
  0x11   :  { %36 = vsyncpa [#allocation19], 0 }
  0x12   :  { %37 = vsyncpa [#allocation22], 0 }
  0x13   :  { %38 = vsyncpa [#allocation5], 0  ;;  %s3026_s27 = smov [#allocation6]   ;;  %s3720_s29 = sld [smem:[#allocation35_spill]] }
  0x14   :  { %s56_s28 = sshll.u32 %s3026_s27, 4  ;;  %s57_s28 = int_to_ptr.vmem [resolvable:$true] %s56_s28 }
  0x19   :  { %s2712_s0 = scalar_lea.hbm %s3720_s29, 9600 }
  0x1a   :  { %p2713_p0 = scmp.ne.s32.totalorder %s3720_s29, %s2712_s0  ;;  %p2716_p1 = scmp.lt.u32.totalorder %s2712_s0, %s3720_s29 }
  0x1c   :  { %p2718_p2 = pnand %p2716_p1, %p2713_p0 }
  0x1e   :  { %2721 = shalt.err (!%p2718_p2)
}
  0x1f   :  { %s2722_s25 = scalar_lea.vmem %s57_s28, 9600  ;;  %p2727_p4 = scmp.lt.s32.totalorder %s57_s28, %s57_s28 }
  0x20   :  { %p2723_p3 = scmp.ne.s32.totalorder %s57_s28, %s2722_s25  ;;  %p2728_p5 = scmp.lt.s32.totalorder %s2722_s25, %s2722_s25 }
  0x22   :  { %p2729_p6 = por %p2728_p5, %p2727_p4 }
  0x24   :  { %p2730_p7 = pnand %p2729_p6, %p2723_p3 }
  0x26   :  { %2733 = shalt.err (!%p2730_p7)
}
  0x27   :  { %s3027_s8 = smov 128   ;;  %s3028_s4 = smov 8  }
  0x28   :  { %62 = dma.hbm_to_vmem [thread:$0]  %s3720_s29, 9600, %s57_s28, [#allocation7], %s3027_s8, %s3027_s8, %s3028_s4  }
  0x29   :  { %s3029_s26 = smov [#allocation9]   ;;  %s3030_s6 = smov [#allocation12]  }
  0x2a   :  { %s81_s27 = sshll.u32 %s3029_s26, 4  ;;  %s102_s2 = sshll.u32 %s3030_s6, 4  ;;  %s82_s27 = int_to_ptr.vmem [resolvable:$true] %s81_s27  ;;  %s103_s2 = int_to_ptr.vmem [resolvable:$true] %s102_s2 }
  0x2b   :  { %s3721_s30 = sld [smem:[#allocation38_spill]] }
  0x31   :  { %s2734_s22 = scalar_lea.hbm %s3721_s30, 32 }
  0x32   :  { %p2735_p8 = scmp.ne.s32.totalorder %s3721_s30, %s2734_s22  ;;  %p2738_p9 = scmp.lt.u32.totalorder %s2734_s22, %s3721_s30 }
  0x34   :  { %p2740_p10 = pnand %p2738_p9, %p2735_p8 }
  0x36   :  { %2743 = shalt.err (!%p2740_p10)
}
  0x37   :  { %s2744_s28 = scalar_lea.vmem %s82_s27, 32  ;;  %p2749_p12 = scmp.lt.s32.totalorder %s82_s27, %s82_s27 }
  0x38   :  { %p2745_p11 = scmp.ne.s32.totalorder %s82_s27, %s2744_s28  ;;  %p2750_p13 = scmp.lt.s32.totalorder %s2744_s28, %s2744_s28 }
  0x3a   :  { %p2751_p0 = por %p2750_p13, %p2749_p12 }
  0x3c   :  { %p2752_p1 = pnand %p2751_p0, %p2745_p11 }
  0x3e   :  { %2755 = shalt.err (!%p2752_p1)
}
  0x3f   :  { %84 = dma.hbm_to_vmem [thread:$0]  %s3721_s30, 32, %s82_s27, [#allocation10]  }
  0x40   :  { %s3722_s5 = sld [smem:[#allocation41_spill]] }
  0x46   :  { %s2756_s26 = scalar_lea.hbm %s3722_s5, 448 }
  0x47   :  { %p2757_p2 = scmp.ne.s32.totalorder %s3722_s5, %s2756_s26  ;;  %p2760_p3 = scmp.lt.u32.totalorder %s2756_s26, %s3722_s5 }
  0x49   :  { %p2762_p4 = pnand %p2760_p3, %p2757_p2 }
  0x4b   :  { %2765 = shalt.err (!%p2762_p4)
}
  0x4c   :  { %s2766_s7 = scalar_lea.vmem %s103_s2, 448  ;;  %p2771_p6 = scmp.lt.s32.totalorder %s103_s2, %s103_s2 }
  0x4d   :  { %p2767_p5 = scmp.ne.s32.totalorder %s103_s2, %s2766_s7  ;;  %p2772_p7 = scmp.lt.s32.totalorder %s2766_s7, %s2766_s7 }
  0x4f   :  { %p2773_p8 = por %p2772_p7, %p2771_p6 }
  0x51   :  { %p2774_p9 = pnand %p2773_p8, %p2767_p5 }
  0x53   :  { %2777 = shalt.err (!%p2774_p9)
}
  0x54   :  { %s3031_s27 = smov 64   ;;  %s3032_s30 = smov 4  }
  0x55   :  { %108 = dma.hbm_to_vmem [thread:$0]  %s3722_s5, 448, %s103_s2, [#allocation13], %s3031_s27, %s3031_s27, %s3032_s30  }
  0x56   :  { %s3033_s25 = smov [#allocation15]   ;;  %s3034_s29 = smov [#allocation18]  }
  0x57   :  { %s127_s28 = sshll.u32 %s3033_s25, 4  ;;  %s148_s8 = sshll.u32 %s3034_s29, 4  ;;  %s128_s28 = int_to_ptr.vmem [resolvable:$true] %s127_s28  ;;  %s149_s8 = int_to_ptr.vmem [resolvable:$true] %s148_s8 }
  0x58   :  { %s2778_s26 = scalar_lea.hbm %s3687_s11, 16 }
  0x59   :  { %p2779_p10 = scmp.ne.s32.totalorder %s3687_s11, %s2778_s26  ;;  %p2782_p11 = scmp.lt.u32.totalorder %s2778_s26, %s3687_s11 }
  0x5b   :  { %p2784_p12 = pnand %p2782_p11, %p2779_p10 }
  0x5d   :  { %2787 = shalt.err (!%p2784_p12)
}
  0x5e   :  { %s2788_s2 = scalar_lea.vmem %s128_s28, 16  ;;  %s2792_s5 = scalar_lea.vmem %s128_s28, 32 }
  0x5f   :  { %p2789_p13 = scmp.ne.s32.totalorder %s128_s28, %s2788_s2  ;;  %p2793_p0 = scmp.lt.s32.totalorder %s128_s28, %s128_s28 }
  0x60   :  { %p2794_p1 = scmp.lt.s32.totalorder %s2792_s5, %s2788_s2 }
  0x62   :  { %p2795_p2 = por %p2794_p1, %p2793_p0 }
  0x64   :  { %p2796_p3 = pnand %p2795_p2, %p2789_p13 }
  0x66   :  { %2799 = shalt.err (!%p2796_p3)
}
  0x67   :  { %130 = dma.hbm_to_vmem [thread:$0]  %s3687_s11, 16, %s128_s28, [#allocation16]  }
  0x68   :  { %s2800_s29 = scalar_lea.hbm %s3690_s14, 512 }
  0x69   :  { %p2801_p4 = scmp.ne.s32.totalorder %s3690_s14, %s2800_s29  ;;  %p2804_p5 = scmp.lt.u32.totalorder %s2800_s29, %s3690_s14 }
  0x6b   :  { %p2806_p6 = pnand %p2804_p5, %p2801_p4 }
  0x6d   :  { %2809 = shalt.err (!%p2806_p6)
}
  0x6e   :  { %s2810_s24 = scalar_lea.vmem %s149_s8, 512  ;;  %p2815_p8 = scmp.lt.s32.totalorder %s149_s8, %s149_s8 }
  0x6f   :  { %p2811_p7 = scmp.ne.s32.totalorder %s149_s8, %s2810_s24  ;;  %p2816_p9 = scmp.lt.s32.totalorder %s2810_s24, %s2810_s24 }
  0x71   :  { %p2817_p10 = por %p2816_p9, %p2815_p8 }
  0x73   :  { %p2818_p11 = pnand %p2817_p10, %p2811_p7 }
  0x75   :  { %2821 = shalt.err (!%p2818_p11)
}
  0x76   :  { %154 = dma.hbm_to_vmem [thread:$0]  %s3690_s14, 512, %s149_s8, [#allocation19], %s3031_s27, %s3031_s27, %s3032_s30  }
  0x77   :  { %s3035_s6 = smov [#allocation21]   ;;  %s3036_s2 = smov [#allocation3]  }
  0x78   :  { %s173_s0 = sshll.u32 %s3035_s6, 4  ;;  %s45_s5 = sshll.u32 %s3036_s2, 4  ;;  %s174_s0 = int_to_ptr.vmem [resolvable:$true] %s173_s0  ;;  %s46_s5 = int_to_ptr.vmem [resolvable:$true] %s45_s5 }
  0x79   :  { %s2822_s3 = scalar_lea.hbm %s3692_s16, 16 }
  0x7a   :  { %p2823_p12 = scmp.ne.s32.totalorder %s3692_s16, %s2822_s3  ;;  %p2826_p13 = scmp.lt.u32.totalorder %s2822_s3, %s3692_s16 }
  0x7c   :  { %p2828_p0 = pnand %p2826_p13, %p2823_p12 }
  0x7e   :  { %2831 = shalt.err (!%p2828_p0)
}
  0x7f   :  { %s2832_s14 = scalar_lea.vmem %s174_s0, 16  ;;  %s2836_s8 = scalar_lea.vmem %s174_s0, 32 }
  0x80   :  { %p2833_p1 = scmp.ne.s32.totalorder %s174_s0, %s2832_s14  ;;  %p2837_p2 = scmp.lt.s32.totalorder %s174_s0, %s174_s0 }
  0x81   :  { %p2838_p3 = scmp.lt.s32.totalorder %s2836_s8, %s2832_s14 }
  0x83   :  { %p2839_p4 = por %p2838_p3, %p2837_p2 }
  0x85   :  { %p2840_p5 = pnand %p2839_p4, %p2833_p1 }
  0x87   :  { %2843 = shalt.err (!%p2840_p5)
}
  0x88   :  { %176 = dma.hbm_to_vmem [thread:$0]  %s3692_s16, 16, %s174_s0, [#allocation22]  }
  0x89   :  { %s3723_s28 = sld [smem:[#allocation33_spill]] }
  0x8f   :  { %s2844_s6 = scalar_lea.hbm %s3723_s28, 320 }
  0x90   :  { %p2845_p6 = scmp.ne.s32.totalorder %s3723_s28, %s2844_s6  ;;  %p2848_p7 = scmp.lt.u32.totalorder %s2844_s6, %s3723_s28 }
  0x92   :  { %p2850_p8 = pnand %p2848_p7, %p2845_p6 }
  0x94   :  { %2853 = shalt.err (!%p2850_p8)
}
  0x95   :  { %s2854_s25 = scalar_lea.vmem %s46_s5, 320  ;;  %p2859_p10 = scmp.lt.s32.totalorder %s46_s5, %s46_s5 }
  0x96   :  { %p2855_p9 = scmp.ne.s32.totalorder %s46_s5, %s2854_s25  ;;  %p2860_p11 = scmp.lt.s32.totalorder %s2854_s25, %s2854_s25 }
  0x98   :  { %p2861_p12 = por %p2860_p11, %p2859_p10 }
  0x9a   :  { %p2862_p13 = pnand %p2861_p12, %p2855_p9 }
  0x9c   :  { %2865 = shalt.err (!%p2862_p13)
}
  0x9d   :  { %48 = dma.hbm_to_vmem [thread:$0]  %s3723_s28, 320, %s46_s5, [#allocation4]  }
  0x9e   :  { %s3037_s29 = smov [#allocation8]   ;;  %s3038_s1 = smov [#allocation11]  }
  0x9f   :  { %s69_s4 = sshll.u32 %s3037_s29, 4  ;;  %s93_s14 = sshll.u32 %s3038_s1, 4  ;;  %s70_s4 = int_to_ptr.vmem [resolvable:$true] %s69_s4  ;;  %s94_s14 = int_to_ptr.vmem [resolvable:$true] %s93_s14 }
  0xa0   :  { %s3724_s21 = sld [smem:[#allocation36_spill]] }
  0xa6   :  { %s2866_s24 = scalar_lea.hbm %s3724_s21, 32 }
  0xa7   :  { %p2867_p0 = scmp.ne.s32.totalorder %s3724_s21, %s2866_s24  ;;  %p2870_p1 = scmp.lt.u32.totalorder %s2866_s24, %s3724_s21 }
  0xa9   :  { %p2872_p2 = pnand %p2870_p1, %p2867_p0 }
  0xab   :  { %2875 = shalt.err (!%p2872_p2)
}
  0xac   :  { %s2876_s5 = scalar_lea.vmem %s70_s4, 32  ;;  %p2881_p4 = scmp.lt.s32.totalorder %s70_s4, %s70_s4 }
  0xad   :  { %p2877_p3 = scmp.ne.s32.totalorder %s70_s4, %s2876_s5  ;;  %p2882_p5 = scmp.lt.s32.totalorder %s2876_s5, %s2876_s5 }
  0xaf   :  { %p2883_p6 = por %p2882_p5, %p2881_p4 }
  0xb1   :  { %p2884_p7 = pnand %p2883_p6, %p2877_p3 }
  0xb3   :  { %2887 = shalt.err (!%p2884_p7)
}
  0xb4   :  { %72 = dma.hbm_to_vmem [thread:$0]  %s3724_s21, 32, %s70_s4, [#allocation7]  }
  0xb5   :  { %s3725_s16 = sld [smem:[#allocation40_spill]] }
  0xbb   :  { %s2888_s0 = scalar_lea.hbm %s3725_s16, 16 }
  0xbc   :  { %p2889_p8 = scmp.ne.s32.totalorder %s3725_s16, %s2888_s0  ;;  %p2892_p9 = scmp.lt.u32.totalorder %s2888_s0, %s3725_s16 }
  0xbe   :  { %p2894_p10 = pnand %p2892_p9, %p2889_p8 }
  0xc0   :  { %2897 = shalt.err (!%p2894_p10)
}
  0xc1   :  { %s2898_s24 = scalar_lea.vmem %s94_s14, 16  ;;  %s2902_s11 = scalar_lea.vmem %s94_s14, 32 }
  0xc2   :  { %p2899_p11 = scmp.ne.s32.totalorder %s94_s14, %s2898_s24  ;;  %p2903_p12 = scmp.lt.s32.totalorder %s94_s14, %s94_s14 }
  0xc3   :  { %p2904_p13 = scmp.lt.s32.totalorder %s2902_s11, %s2898_s24 }
  0xc5   :  { %p2905_p0 = por %p2904_p13, %p2903_p12 }
  0xc7   :  { %p2906_p1 = pnand %p2905_p0, %p2899_p11 }
  0xc9   :  { %2909 = shalt.err (!%p2906_p1)
}
  0xca   :  { %96 = dma.hbm_to_vmem [thread:$0]  %s3725_s16, 16, %s94_s14, [#allocation10]  }
  0xcb   :  { %s3039_s6 = smov [#allocation14]   ;;  %s3040_s7 = smov [#allocation17]  }
  0xcc   :  { %s115_s2 = sshll.u32 %s3039_s6, 4  ;;  %s139_s5 = sshll.u32 %s3040_s7, 4  ;;  %s116_s2 = int_to_ptr.vmem [resolvable:$true] %s115_s2  ;;  %s140_s5 = int_to_ptr.vmem [resolvable:$true] %s139_s5 }
  0xcd   :  { %s2910_s3 = scalar_lea.hbm %s3685_s9, 16 }
  0xce   :  { %p2911_p2 = scmp.ne.s32.totalorder %s3685_s9, %s2910_s3  ;;  %p2914_p3 = scmp.lt.u32.totalorder %s2910_s3, %s3685_s9 }
  0xd0   :  { %p2916_p4 = pnand %p2914_p3, %p2911_p2 }
  0xd2   :  { %2919 = shalt.err (!%p2916_p4)
}
  0xd3   :  { %s2920_s14 = scalar_lea.vmem %s116_s2, 16  ;;  %s2924_s16 = scalar_lea.vmem %s116_s2, 32 }
  0xd4   :  { %p2921_p5 = scmp.ne.s32.totalorder %s116_s2, %s2920_s14  ;;  %p2925_p6 = scmp.lt.s32.totalorder %s116_s2, %s116_s2 }
  0xd5   :  { %p2926_p7 = scmp.lt.s32.totalorder %s2924_s16, %s2920_s14 }
  0xd7   :  { %p2927_p8 = por %p2926_p7, %p2925_p6 }
  0xd9   :  { %p2928_p9 = pnand %p2927_p8, %p2921_p5 }
  0xdb   :  { %2931 = shalt.err (!%p2928_p9)
}
  0xdc   :  { %118 = dma.hbm_to_vmem [thread:$0]  %s3685_s9, 16, %s116_s2, [#allocation13]  }
  0xdd   :  { %s2932_s4 = scalar_lea.hbm %s3689_s13, 16 }
  0xde   :  { %p2933_p10 = scmp.ne.s32.totalorder %s3689_s13, %s2932_s4  ;;  %p2936_p11 = scmp.lt.u32.totalorder %s2932_s4, %s3689_s13 }
  0xe0   :  { %p2938_p12 = pnand %p2936_p11, %p2933_p10 }
  0xe2   :  { %2941 = shalt.err (!%p2938_p12)
}
  0xe3   :  { %s2942_s22 = scalar_lea.vmem %s140_s5, 16  ;;  %s2946_s3 = scalar_lea.vmem %s140_s5, 32 }
  0xe4   :  { %p2943_p13 = scmp.ne.s32.totalorder %s140_s5, %s2942_s22  ;;  %p2947_p0 = scmp.lt.s32.totalorder %s140_s5, %s140_s5 }
  0xe5   :  { %p2948_p1 = scmp.lt.s32.totalorder %s2946_s3, %s2942_s22 }
  0xe7   :  { %p2949_p2 = por %p2948_p1, %p2947_p0 }
  0xe9   :  { %p2950_p3 = pnand %p2949_p2, %p2943_p13 }
  0xeb   :  { %2953 = shalt.err (!%p2950_p3)
}
  0xec   :  { %142 = dma.hbm_to_vmem [thread:$0]  %s3689_s13, 16, %s140_s5, [#allocation16]  }
  0xed   :  { %s3041_s25 = smov [#allocation20]   ;;  %s3042_s29 = smov [#allocation23]  }
  0xee   :  { %s160_s0 = sshll.u32 %s3041_s25, 4  ;;  %s185_s1 = sshll.u32 %s3042_s29, 4  ;;  %s161_s0 = int_to_ptr.vmem [resolvable:$true] %s160_s0  ;;  %s186_s1 = int_to_ptr.vmem [resolvable:$true] %s185_s1 }
  0xef   :  { %s2954_s8 = scalar_lea.hbm %s3691_s15, 512 }
  0xf0   :  { %p2955_p4 = scmp.ne.s32.totalorder %s3691_s15, %s2954_s8  ;;  %p2958_p5 = scmp.lt.u32.totalorder %s2954_s8, %s3691_s15 }
  0xf2   :  { %p2960_p6 = pnand %p2958_p5, %p2955_p4 }
  0xf4   :  { %2963 = shalt.err (!%p2960_p6)
}
  0xf5   :  { %s2964_s13 = scalar_lea.vmem %s161_s0, 512  ;;  %p2969_p8 = scmp.lt.s32.totalorder %s161_s0, %s161_s0 }
  0xf6   :  { %p2965_p7 = scmp.ne.s32.totalorder %s161_s0, %s2964_s13  ;;  %p2970_p9 = scmp.lt.s32.totalorder %s2964_s13, %s2964_s13 }
  0xf8   :  { %p2971_p10 = por %p2970_p9, %p2969_p8 }
  0xfa   :  { %p2972_p11 = pnand %p2971_p10, %p2965_p7 }
  0xfc   :  { %2975 = shalt.err (!%p2972_p11)
}
  0xfd   :  { %166 = dma.hbm_to_vmem [thread:$0]  %s3691_s15, 512, %s161_s0, [#allocation19], %s3031_s27, %s3031_s27, %s3032_s30  }
  0xfe   :  { %s203_s28 = sshll.u32 %s3699_s23, 4  ;;  %s2976_s9 = scalar_lea.hbm %s3694_s18, 16  ;;  %s204_s28 = int_to_ptr.vmem [resolvable:$true] %s203_s28 }
  0xff   :  { %p2977_p12 = scmp.ne.s32.totalorder %s3694_s18, %s2976_s9  ;;  %p2980_p13 = scmp.lt.u32.totalorder %s2976_s9, %s3694_s18 }
 0x101   :  { %p2982_p0 = pnand %p2980_p13, %p2977_p12 }
 0x103   :  { %2985 = shalt.err (!%p2982_p0)
}
 0x104   :  { %s2986_s15 = scalar_lea.vmem %s186_s1, 16  ;;  %s2990_s27 = scalar_lea.vmem %s186_s1, 32 }
 0x105   :  { %p2987_p1 = scmp.ne.s32.totalorder %s186_s1, %s2986_s15  ;;  %p2991_p2 = scmp.lt.s32.totalorder %s186_s1, %s186_s1 }
 0x106   :  { %p2992_p3 = scmp.lt.s32.totalorder %s2990_s27, %s2986_s15 }
 0x108   :  { %p2993_p4 = por %p2992_p3, %p2991_p2 }
 0x10a   :  { %p2994_p5 = pnand %p2993_p4, %p2987_p1 }
 0x10c   :  { %2997 = shalt.err (!%p2994_p5)
}
 0x10d   :  { %188 = dma.hbm_to_vmem [thread:$0]  %s3694_s18, 16, %s186_s1, [#allocation22]  }
 0x10e   :  { %s2998_s0 = scalar_lea.vmem %s204_s28, 16  ;;  %p3003_p7 = scmp.lt.s32.totalorder %s204_s28, %s204_s28 }
 0x10f   :  { %p2999_p6 = scmp.ne.s32.totalorder %s204_s28, %s2998_s0  ;;  %p3004_p8 = scmp.lt.s32.totalorder %s2998_s0, %s2998_s0 }
 0x111   :  { %p3005_p9 = por %p3004_p8, %p3003_p7 }
 0x113   :  { %p3006_p10 = pnand %p3005_p9, %p2999_p6 }
 0x115   :  { %3009 = shalt.err (!%p3006_p10)
}
 0x116   :  { %s3043_s16 = smov [#allocation24]  }
 0x117   :  { %206 = dma.vmem_to_smem %s204_s28, 16, %s3043_s16, [#allocation5]  }
 0x118   :  { %3010 = dma.done.wait [#allocation4], 320  }
 0x119   :  { %3011 = vsyncadd [#allocation4], 4294966976 }
 0x11a   :  { %3012 = dma.done.wait [#allocation7], 9632  }
 0x11b   :  { %3013 = vsyncadd [#allocation7], 4294957664 }
 0x11c   :  { %3014 = dma.done.wait [#allocation10], 48  }
 0x11d   :  { %3015 = vsyncadd [#allocation10], 4294967248 }
 0x11e   :  { %3016 = dma.done.wait [#allocation13], 464  }
 0x11f   :  { %3017 = vsyncadd [#allocation13], 4294966832 }
 0x120   :  { %3018 = dma.done.wait [#allocation16], 32  }
 0x121   :  { %3019 = vsyncadd [#allocation16], 4294967264 }
 0x122   :  { %3020 = dma.done.wait [#allocation19], 1024  }
 0x123   :  { %3021 = vsyncadd [#allocation19], 4294966272 }
 0x124   :  { %3022 = dma.done.wait [#allocation22], 32  }
 0x125   :  { %3023 = vsyncadd [#allocation22], 4294967264 }
 0x126   :  { %3024 = dma.done.wait [#allocation5], 16  }
 0x127   :  { %3025 = vsyncadd [#allocation5], 4294967280 }
 0x128   :  { %249 = sfence }
 0x129   :  { %v2486_v1 = vld [vmem:[#allocation6 + $0x4] ss:$8 sps:$4 sm:$0xff]   ;;  %v2488_v2 = vld [vmem:[#allocation6] ss:$8 sps:$4 sm:$0xff]   ;;  %v2489_v3 = vld [vmem:[#allocation6 + $0x14] ss:$8 sps:$4 sm:$0xff]  }
 0x12a   :  { %747 = vmatprep.subr.bf16.mxu0 %v2486_v1  ;;  %v2491_v4 = vld [vmem:[#allocation6 + $0x10] ss:$8 sps:$4 sm:$0xff]   ;;  %v2492_v5 = vld [vmem:[#allocation6 + $0x24] ss:$8 sps:$4 sm:$0xff]   ;;  %v2494_v6 = vld [vmem:[#allocation6 + $0x20] ss:$8 sps:$4 sm:$0xff]  }
 0x12b   :  { %748 = vmatpush1.bf16.msra.mxu0 %v2488_v2  ;;  %v2495_v7 = vld [vmem:[#allocation6 + $0x34] ss:$8 sps:$4 sm:$0xff]   ;;  %v2497_v8 = vld [vmem:[#allocation6 + $0x30] ss:$8 sps:$4 sm:$0xff]   ;;  %v2498_v9 = vld [vmem:[#allocation6 + $0x44] ss:$8 sps:$4 sm:$0xff]  }
 0x12c   :  { %749 = vmatprep.subr.bf16.mxu0 %v2489_v3  ;;  %v2500_v10 = vld [vmem:[#allocation6 + $0x40] ss:$8 sps:$4 sm:$0xff]   ;;  %v2501_v11 = vld [vmem:[#allocation6 + $0x54] ss:$8 sps:$4 sm:$0xff]   ;;  %v2503_v12 = vld [vmem:[#allocation6 + $0x50] ss:$8 sps:$4 sm:$0xff]  }
 0x12d   :  { %v2504_v13 = vld [vmem:[#allocation6 + $0x64] ss:$8 sps:$4 sm:$0xff]   ;;  %v2506_v16 = vld [vmem:[#allocation6 + $0x60] ss:$8 sps:$4 sm:$0xff]   ;;  %v2507_v17 = vld [vmem:[#allocation6 + $0x74] ss:$8 sps:$4 sm:$0xff]  }
 0x12e   :  { %v3344_v14 = vld [vmem:[#allocation3] sm:$0xff]  ;;  %v2512_v20 = vld [vmem:[#allocation6 + $0x80] ss:$8 sps:$4 sm:$0xff]   ;;  %v2513_v21 = vld [vmem:[#allocation6 + $0x94] ss:$8 sps:$4 sm:$0xff]   ;;  %s3726_s8 = sld [smem:[#allocation37_spill]] }
 0x12f   :  { %750 = vmatpush1.bf16.msra.mxu0 %v2491_v4  ;;  %v2072_v15 = vcombine.high %v3344_v14, %v3344_v14  ;;  %v2509_v18 = vld [vmem:[#allocation6 + $0x70] ss:$8 sps:$4 sm:$0xff]   ;;  %v2510_v19 = vld [vmem:[#allocation6 + $0x84] ss:$8 sps:$4 sm:$0xff]   ;;  %v2518_v24 = vld [vmem:[#allocation6 + $0xa0] ss:$8 sps:$4 sm:$0xff]   ;;  %v2071_v44 = vcombine.low %v3344_v14, %v3344_v14 }
 0x130   :  { %751 = vmatprep.subr.bf16.mxu0 %v2492_v5  ;;  %v2515_v22 = vld [vmem:[#allocation6 + $0x90] ss:$8 sps:$4 sm:$0xff]   ;;  %v2516_v23 = vld [vmem:[#allocation6 + $0xa4] ss:$8 sps:$4 sm:$0xff]   ;;  %v2519_v25 = vld [vmem:[#allocation6 + $0xb4] ss:$8 sps:$4 sm:$0xff]  }
 0x131   :  { %779 = vmatprep.mubr.bf16.mxu0 %v2072_v15  ;;  %v2521_v26 = vld [vmem:[#allocation6 + $0xb0] ss:$8 sps:$4 sm:$0xff]   ;;  %v2522_v27 = vld [vmem:[#allocation6 + $0xc4] ss:$8 sps:$4 sm:$0xff]   ;;  %v2524_v28 = vld [vmem:[#allocation6 + $0xc0] ss:$8 sps:$4 sm:$0xff]  }
 0x132   :  { %v2525_v29 = vld [vmem:[#allocation6 + $0xd4] ss:$8 sps:$4 sm:$0xff]   ;;  %v2527_v30 = vld [vmem:[#allocation6 + $0xd0] ss:$8 sps:$4 sm:$0xff]   ;;  %v2528_v31 = vld [vmem:[#allocation6 + $0xe4] ss:$8 sps:$4 sm:$0xff]  }
 0x133   :  { %752 = vmatpush1.bf16.msra.mxu0 %v2494_v6  ;;  %v2530_v35 = vld [vmem:[#allocation6 + $0xe0] ss:$8 sps:$4 sm:$0xff]   ;;  %v2531_v38 = vld [vmem:[#allocation6 + $0xf4] ss:$8 sps:$4 sm:$0xff]   ;;  %v2533_v39 = vld [vmem:[#allocation6 + $0xf0] ss:$8 sps:$4 sm:$0xff]  }
 0x134   :  { %753 = vmatprep.subr.bf16.mxu0 %v2495_v7  ;;  %v2604_v32 = vld [vmem:[%s3726_s8 + $0x4] ss:$8 sps:$4 sm:$0xff]   ;;  %v2606_v33 = vld [vmem:[%s3726_s8] ss:$8 sps:$4 sm:$0xff]   ;;  %v2607_v34 = vld [vmem:[%s3726_s8 + $0x14] ss:$8 sps:$4 sm:$0xff]  }
 0x135   :  { %1084 = vmatprep.subr.bf16.mxu1 %v2604_v32  ;;  %v2609_v36 = vld [vmem:[%s3726_s8 + $0x10] ss:$8 sps:$4 sm:$0xff]   ;;  %v2610_v37 = vld [vmem:[%s3726_s8 + $0x24] ss:$8 sps:$4 sm:$0xff]   ;;  %v2612_v41 = vld [vmem:[%s3726_s8 + $0x20] ss:$8 sps:$4 sm:$0xff]  }
 0x136   :  { %1085 = vmatpush1.bf16.msra.mxu1 %v2606_v33  ;;  %v2538_v40 = vld [vmem:[#allocation6 + $0x104] ss:$8 sps:$4 sm:$0xff]   ;;  %v3369_v43 = vld [vmem:[#allocation3 + $0x8] sm:$0xff]  ;;  %v2536_v45 = vld [vmem:[#allocation6 + $0x100] ss:$8 sps:$4 sm:$0xff]   ;;  %vm737_vm0 = vcmask 1041408  }
 0x137   :  { %754 = vmatpush1.bf16.msra.mxu0 %v2497_v8  ;;  %1086 = vmatprep.subr.bf16.mxu1 %v2607_v34  ;;  %v2613_v42 = vld [vmem:[%s3726_s8 + $0x34] ss:$8 sps:$4 sm:$0xff]   ;;  %v2615_v46 = vld [vmem:[%s3726_s8 + $0x30] ss:$8 sps:$4 sm:$0xff]   ;;  %v2074_v48 = vcombine.high %v3369_v43, %v3369_v43  ;;  %v2616_v49 = vld [vmem:[%s3726_s8 + $0x44] ss:$8 sps:$4 sm:$0xff]  }
 0x138   :  { %755 = vmatprep.subr.bf16.mxu0 %v2498_v9  ;;  %v2541_v47 = vld [vmem:[#allocation6 + $0x114] ss:$8 sps:$4 sm:$0xff]   ;;  %v2539_v50 = vld [vmem:[#allocation6 + $0x110] ss:$8 sps:$4 sm:$0xff]   ;;  %v2544_v53 = vld [vmem:[#allocation6 + $0x124] ss:$8 sps:$4 sm:$0xff]  }
 0x139   :  { %v2618_v51 = vld [vmem:[%s3726_s8 + $0x40] ss:$8 sps:$4 sm:$0xff]   ;;  %v2619_v52 = vld [vmem:[%s3726_s8 + $0x54] ss:$8 sps:$4 sm:$0xff]   ;;  %v2621_v55 = vld [vmem:[%s3726_s8 + $0x50] ss:$8 sps:$4 sm:$0xff]  }
 0x13a   :  { %1087 = vmatpush1.bf16.msra.mxu1 %v2609_v36  ;;  %v2542_v54 = vld [vmem:[#allocation6 + $0x120] ss:$8 sps:$4 sm:$0xff]   ;;  %v2622_v56 = vld [vmem:[%s3726_s8 + $0x64] ss:$8 sps:$4 sm:$0xff]   ;;  %vm738_vm1 = vcmask 1042432   ;;  %vm733_vm2 = vcmask 695296  }
 0x13b   :  { %756 = vmatpush1.bf16.msra.mxu0 %v2500_v10  ;;  %1088 = vmatprep.subr.bf16.mxu1 %v2610_v37  ;;  %v2547_v57 = vld [vmem:[#allocation6 + $0x134] ss:$8 sps:$4 sm:$0xff]   ;;  %v2545_v59 = vld [vmem:[#allocation6 + $0x130] ss:$8 sps:$4 sm:$0xff]   ;;  %v2550_v61 = vld [vmem:[#allocation6 + $0x144] ss:$8 sps:$4 sm:$0xff]  }
 0x13c   :  { %757 = vmatprep.subr.bf16.mxu0 %v2501_v11  ;;  %v2624_v58 = vld [vmem:[%s3726_s8 + $0x60] ss:$8 sps:$4 sm:$0xff]   ;;  %v2625_v60 = vld [vmem:[%s3726_s8 + $0x74] ss:$8 sps:$4 sm:$0xff]   ;;  %v2627_v62 = vld [vmem:[%s3726_s8 + $0x70] ss:$8 sps:$4 sm:$0xff]  }
 0x13d   :  { %v2548_v63 = vld [vmem:[#allocation6 + $0x140] ss:$8 sps:$4 sm:$0xff]   ;;  %v2628_v0 = vld [vmem:[%s3726_s8 + $0x84] ss:$8 sps:$4 sm:$0xff]   ;;  %s3727_s25 = sld [smem:[#allocation39_spill]]  ;;  %s870_s29 = sld [smem:[#allocation24]] }
 0x13e   :  { %1089 = vmatpush1.bf16.msra.mxu1 %v2612_v41  ;;  %v2553_v1 = vld [vmem:[#allocation6 + $0x154] ss:$8 sps:$4 sm:$0xff]   ;;  %v2551_v3 = vld [vmem:[#allocation6 + $0x150] ss:$8 sps:$4 sm:$0xff]   ;;  %v2556_v5 = vld [vmem:[#allocation6 + $0x164] ss:$8 sps:$4 sm:$0xff]  }
 0x13f   :  { %758 = vmatpush1.bf16.msra.mxu0 %v2503_v12  ;;  %1090 = vmatprep.subr.bf16.mxu1 %v2613_v42  ;;  %v2630_v2 = vld [vmem:[%s3726_s8 + $0x80] ss:$8 sps:$4 sm:$0xff]   ;;  %v2631_v4 = vld [vmem:[%s3726_s8 + $0x94] ss:$8 sps:$4 sm:$0xff]   ;;  %v2633_v6 = vld [vmem:[%s3726_s8 + $0x90] ss:$8 sps:$4 sm:$0xff]  }
 0x140   :  { %759 = vmatprep.subr.bf16.mxu0 %v2504_v13  ;;  %v2554_v7 = vld [vmem:[#allocation6 + $0x160] ss:$8 sps:$4 sm:$0xff]   ;;  %v2634_v8 = vld [vmem:[%s3726_s8 + $0xa4] ss:$8 sps:$4 sm:$0xff]   ;;  %vm3047_vm5 = vmmov 0   ;;  %s2185_s30 = sld [smem:[#allocation24 + $0x1]] }
 0x141   :  { %v2559_v9 = vld [vmem:[#allocation6 + $0x174] ss:$8 sps:$4 sm:$0xff]   ;;  %v2557_v11 = vld [vmem:[#allocation6 + $0x170] ss:$8 sps:$4 sm:$0xff]   ;;  %v2562_v13 = vld [vmem:[#allocation6 + $0x184] ss:$8 sps:$4 sm:$0xff]  }
 0x142   :  { %1091 = vmatpush1.bf16.msra.mxu1 %v2615_v46  ;;  %v2636_v10 = vld [vmem:[%s3726_s8 + $0xa0] ss:$8 sps:$4 sm:$0xff]   ;;  %v2637_v12 = vld [vmem:[%s3726_s8 + $0xb4] ss:$8 sps:$4 sm:$0xff]   ;;  %v2639_v14 = vld [vmem:[%s3726_s8 + $0xb0] ss:$8 sps:$4 sm:$0xff]  }
 0x143   :  { %760 = vmatpush1.bf16.msra.mxu0 %v2506_v16  ;;  %1092 = vmatprep.subr.bf16.mxu1 %v2616_v49  ;;  %v2560_v15 = vld [vmem:[#allocation6 + $0x180] ss:$8 sps:$4 sm:$0xff]   ;;  %v2640_v16 = vld [vmem:[%s3726_s8 + $0xc4] ss:$8 sps:$4 sm:$0xff]   ;;  %vm1355_vm8 = vcmask 1043456   ;;  %s3728_s16 = sld [smem:[#allocation34_spill]] }
 0x144   :  { %761 = vmatprep.subr.bf16.mxu0 %v2507_v17  ;;  %v2565_v17 = vld [vmem:[#allocation6 + $0x194] ss:$8 sps:$4 sm:$0xff]   ;;  %v2581_v33 = vld [vmem:[#allocation6 + $0x1f0] ss:$8 sps:$4 sm:$0xff]   ;;  %v2588_v34 = vld [vmem:[#allocation6 + $0x204] ss:$8 sps:$4 sm:$0xff]  }
 0x145   :  { %v2583_v32 = vld [vmem:[#allocation6 + $0x1f4] ss:$8 sps:$4 sm:$0xff]   ;;  %v2586_v36 = vld [vmem:[#allocation6 + $0x200] ss:$8 sps:$4 sm:$0xff]   ;;  %v2595_v46 = vld [vmem:[#allocation6 + $0x230] ss:$8 sps:$4 sm:$0xff]  }
 0x146   :  { %1093 = vmatpush1.bf16.msra.mxu1 %v2618_v51  ;;  %v2591_v37 = vld [vmem:[#allocation6 + $0x214] ss:$8 sps:$4 sm:$0xff]   ;;  %v2592_v41 = vld [vmem:[#allocation6 + $0x220] ss:$8 sps:$4 sm:$0xff]   ;;  %vm1351_vm9 = vcmask 457728   ;;  %s2220_s13 = sld [smem:[#allocation24 + $0x4]] }
 0x147   :  { %762 = vmatpush1.bf16.msra.mxu0 %v2509_v18  ;;  %1094 = vmatprep.subr.bf16.mxu1 %v2619_v52  ;;  %v2642_v18 = vld [vmem:[%s3726_s8 + $0xc0] ss:$8 sps:$4 sm:$0xff]   ;;  %s2230_s7 = sld [smem:[#allocation24 + $0x5]]  ;;  %s2203_s28 = sld [smem:[#allocation24 + $0x2]]  ;;  %vm1680_vm13 = vcmask 523264  }
 0x148   :  { %763 = vmatprep.subr.bf16.mxu0 %v2510_v19  ;;  %v2563_v19 = vld [vmem:[#allocation6 + $0x190] ss:$8 sps:$4 sm:$0xff]   ;;  %v2597_v42 = vld [vmem:[#allocation6 + $0x234] ss:$8 sps:$4 sm:$0xff]   ;;  %s2242_s5 = sld [smem:[#allocation24 + $0x6]]  ;;  %s2252_s22 = sld [smem:[#allocation24 + $0x7]] }
 0x149   :  { %s2262_s3 = sld [smem:[#allocation24 + $0x8]]  ;;  %s3730_s14 = sld [smem:[#allocation43_spill]] }
 0x14a   :  { %1095 = vmatpush1.bf16.msra.mxu1 %v2621_v55  ;;  %v2646_v55 = vld [vmem:[%s3726_s8 + $0xe4] ss:$8 sps:$4 sm:$0xff]  }
 0x14b   :  { %764 = vmatpush1.bf16.msra.mxu0 %v2512_v20  ;;  %1096 = vmatprep.subr.bf16.mxu1 %v2622_v56  ;;  %v2643_v20 = vld [vmem:[%s3726_s8 + $0xd4] ss:$8 sps:$4 sm:$0xff]   ;;  %v2648_v56 = vld [vmem:[%s3726_s8 + $0xe0] ss:$8 sps:$4 sm:$0xff]  }
 0x14c   :  { %765 = vmatprep.subr.bf16.mxu0 %v2513_v21  ;;  %v2568_v21 = vld [vmem:[#allocation6 + $0x1a4] ss:$8 sps:$4 sm:$0xff]  }
 0x14e   :  { %1097 = vmatpush1.bf16.msra.mxu1 %v2624_v58  ;;  %v2651_v58 = vld [vmem:[%s3726_s8 + $0xf0] ss:$8 sps:$4 sm:$0xff]  }
 0x14f   :  { %766 = vmatpush1.bf16.msra.mxu0 %v2515_v22  ;;  %1098 = vmatprep.subr.bf16.mxu1 %v2625_v60  ;;  %v2645_v22 = vld [vmem:[%s3726_s8 + $0xd0] ss:$8 sps:$4 sm:$0xff]   ;;  %v331_v60 = vlaneseq }
 0x150   :  { %767 = vmatprep.subr.bf16.mxu0 %v2516_v23  ;;  %v2566_v23 = vld [vmem:[#allocation6 + $0x1a0] ss:$8 sps:$4 sm:$0xff]  }
 0x152   :  { %1099 = vmatpush1.bf16.msra.mxu1 %v2627_v62 }
 0x153   :  { %768 = vmatpush1.bf16.msra.mxu0 %v2518_v24  ;;  %1100 = vmatprep.subr.bf16.mxu1 %v2628_v0  ;;  %v2571_v24 = vld [vmem:[#allocation6 + $0x1b4] ss:$8 sps:$4 sm:$0xff]  }
 0x154   :  { %769 = vmatprep.subr.bf16.mxu0 %v2519_v25  ;;  %v2569_v25 = vld [vmem:[#allocation6 + $0x1b0] ss:$8 sps:$4 sm:$0xff]  }
 0x156   :  { %1101 = vmatpush1.bf16.msra.mxu1 %v2630_v2 }
 0x157   :  { %770 = vmatpush1.bf16.msra.mxu0 %v2521_v26  ;;  %1102 = vmatprep.subr.bf16.mxu1 %v2631_v4  ;;  %v2574_v26 = vld [vmem:[#allocation6 + $0x1c4] ss:$8 sps:$4 sm:$0xff]   ;;  %v873_v4 = vstv %s870_s29  ;;  %s2210_s29 = sld [smem:[#allocation24 + $0x3]] }
 0x158   :  { %771 = vmatprep.subr.bf16.mxu0 %v2522_v27  ;;  %v2572_v27 = vld [vmem:[#allocation6 + $0x1c0] ss:$8 sps:$4 sm:$0xff]  }
 0x15a   :  { %1103 = vmatpush1.bf16.msra.mxu1 %v2633_v6 }
 0x15b   :  { %772 = vmatpush1.bf16.msra.mxu0 %v2524_v28  ;;  %1104 = vmatprep.subr.bf16.mxu1 %v2634_v8  ;;  %v2577_v28 = vld [vmem:[#allocation6 + $0x1d4] ss:$8 sps:$4 sm:$0xff]  }
 0x15c   :  { %773 = vmatprep.subr.bf16.mxu0 %v2525_v29  ;;  %v2575_v29 = vld [vmem:[#allocation6 + $0x1d0] ss:$8 sps:$4 sm:$0xff]  }
 0x15e   :  { %1105 = vmatpush1.bf16.msra.mxu1 %v2636_v10 }
 0x15f   :  { %774 = vmatpush1.bf16.msra.mxu0 %v2527_v30  ;;  %1106 = vmatprep.subr.bf16.mxu1 %v2637_v12  ;;  %v2580_v30 = vld [vmem:[#allocation6 + $0x1e4] ss:$8 sps:$4 sm:$0xff]  }
 0x160   :  { %775 = vmatprep.subr.bf16.mxu0 %v2528_v31  ;;  %v2578_v31 = vld [vmem:[#allocation6 + $0x1e0] ss:$8 sps:$4 sm:$0xff]  }
 0x162   :  { %1107 = vmatpush1.bf16.msra.mxu1 %v2639_v14 }
 0x163   :  { %776 = vmatpush1.bf16.msra.mxu0 %v2530_v35  ;;  %1108 = vmatprep.subr.bf16.mxu1 %v2640_v16  ;;  %v2073_v35 = vcombine.low %v3369_v43, %v3369_v43 }
 0x164   :  { %777 = vmatprep.subr.bf16.mxu0 %v2531_v38  ;;  %v2589_v38 = vld [vmem:[#allocation6 + $0x210] ss:$8 sps:$4 sm:$0xff]  }
 0x166   :  { %1109 = vmatpush1.bf16.msra.mxu1 %v2642_v18  ;;  %v2655_v18 = vld [vmem:[%s3727_s25 + $0x8] sm:$0xff]  }
 0x167   :  { %778 = vmatpush1.bf16.msra.mxu0 %v2533_v39  ;;  %1110 = vmatprep.subr.bf16.mxu1 %v2643_v20  ;;  %v3044_v39 = vmov 0   ;;  %v2657_v20 = vld [vmem:[%s3727_s25 + $0x10] sm:$0xff]  }
 0x168   :  { %788 = vmatprep.subr.bf16.mxu0 %v2538_v40  ;;  %v2594_v40 = vld [vmem:[#allocation6 + $0x224] ss:$8 sps:$4 sm:$0xff]  }
 0x16a   :  { %780 = vmatmul.mubr.bf16.vlgmr.msra.gmra.mrb[0].mxu0 %v2071_v44  ;;  %1111 = vmatpush1.bf16.msra.mxu1 %v2645_v22  ;;  %v328_v44 = vld [vmem:[#allocation6 + $0x250] sm:$0x77]  ;;  %v2659_v22 = vld [vmem:[%s3727_s25 + $0x18] sm:$0xff]  }
 0x16b   :  { %789 = vmatpush1.bf16.msra.mxu0 %v2536_v45  ;;  %820 = vmatprep.mubr.bf16.mxu0 %v2074_v48  ;;  %v3045_v45 = vmov 65535   ;;  %v2151_v48 = vcombine.high %v328_v44, %v328_v44  ;;  %v2150_v51 = vcombine.low %v328_v44, %v328_v44 }
 0x16c   :  { %790 = vmatprep.subr.bf16.mxu0 %v2541_v47  ;;  %v739_v43 = vsel %vm737_vm0, 4294967295, %v3045_v45  ;;  %v2600_v47 = vld [vmem:[#allocation6 + $0x244] ss:$8 sps:$4 sm:$0xff]   ;;  %1112 = vmatprep.subr.bf16.mxu1 %v2646_v55  ;;  %v2673_v55 = vld [vmem:[%s3686_s10 + $0x8] sm:$0xff]  }
 0x16d   :  { %v740_v49 = vsel %vm738_vm1, %v739_v43, 0 }
 0x16e   :  { %v745_v52 = vand.u32 %v2151_v48, %v740_v49  ;;  %1113 = vmatpush1.bf16.msra.mxu1 %v2648_v56  ;;  %v2674_v56 = vld [vmem:[%s3686_s10 + $0x10] sm:$0xff]  }
 0x16f   :  { %791 = vmatpush1.bf16.msra.mxu0 %v2539_v50  ;;  %v2598_v50 = vld [vmem:[#allocation6 + $0x240] ss:$8 sps:$4 sm:$0xff]  }
 0x170   :  { %792 = vmatprep.subr.bf16.mxu0 %v2544_v53  ;;  %v742_v53 = vand.u32 %v2150_v51, %v740_v49  ;;  %v2669_v49 = vld [vmem:[#allocation12 + $0x8] sm:$0xff]   ;;  %v2671_v51 = vld [vmem:[#allocation12 + $0x18] ss:$0 sps:$4 sm:$0xff]  }
 0x173   :  { %793 = vmatpush1.bf16.msra.mxu0 %v2542_v54  ;;  %v2603_v54 = vld [vmem:[#allocation3 + $0x10] ss:$0 sps:$4 sm:$0xff]  }
 0x174   :  { %794 = vmatprep.subr.bf16.mxu0 %v2547_v57  ;;  %v2649_v57 = vld [vmem:[%s3726_s8 + $0xf4] ss:$8 sps:$4 sm:$0xff]  }
 0x175   :  { %1114 = vmatprep.subr.bf16.mxu1 %v2649_v57  ;;  %v2675_v57 = vld [vmem:[%s3686_s10 + $0x18] sm:$0xff]  }
 0x176   :  { %1115 = vmatpush1.bf16.msra.mxu1 %v2651_v58  ;;  %v2676_v58 = vld [vmem:[%s3686_s10 + $0x20] sm:$0xff]  }
 0x177   :  { %795 = vmatpush1.bf16.msra.mxu0 %v2545_v59  ;;  %v2652_v59 = vld [vmem:[%s3727_s25 + $0x40] sm:$0xff]  }
 0x178   :  { %796 = vmatprep.subr.bf16.mxu0 %v2550_v61  ;;  %2265 = vmatprep.subr.bf16.mxu1 %v2652_v59  ;;  %v3455_v61 = vshrl.u32 %v331_v60, 7  ;;  %v2677_v59 = vld [vmem:[%s3686_s10 + $0x28] sm:$0xff]   ;;  %v2678_v60 = vld [vmem:[%s3686_s10 + $0x30] sm:$0xff]  }
 0x17a   :  { %v333_v62 = vsub.s32 0, %v3455_v61  ;;  %v337_v0 = vsub.s32 1, %v3455_v61  ;;  %v2679_v61 = vld [vmem:[%s3686_s10 + $0x38] sm:$0xff]  }
 0x17b   :  { %797 = vmatpush1.bf16.msra.mxu0 %v2548_v63  ;;  %v329_v63 = vld [vmem:[#allocation8] sm:$0x3] }
 0x17c   :  { %798 = vmatprep.subr.bf16.mxu0 %v2553_v1  ;;  %v334_v1 = vrot.slane %v329_v63, %v333_v62  ;;  %v338_v2 = vrot.slane %v329_v63, %v337_v0 }
 0x17f   :  { %799 = vmatpush1.bf16.msra.mxu0 %v2551_v3 }
 0x180   :  { %800 = vmatprep.subr.bf16.mxu0 %v2556_v5 }
 0x183   :  { %801 = vmatpush1.bf16.msra.mxu0 %v2554_v7 }
 0x184   :  { %802 = vmatprep.subr.bf16.mxu0 %v2559_v9 }
 0x187   :  { %803 = vmatpush1.bf16.msra.mxu0 %v2557_v11 }
 0x188   :  { %804 = vmatprep.subr.bf16.mxu0 %v2562_v13 }
 0x18b   :  { %805 = vmatpush1.bf16.msra.mxu0 %v2560_v15  ;;  %v2653_v15 = vld [vmem:[%s3727_s25] sm:$0xff]  }
 0x18c   :  { %806 = vmatprep.subr.bf16.mxu0 %v2565_v17  ;;  %v2654_v17 = vld [vmem:[%s3727_s25 + $0x48] sm:$0xff]  }
 0x18f   :  { %807 = vmatpush1.bf16.msra.mxu0 %v2563_v19  ;;  %v2656_v19 = vld [vmem:[%s3727_s25 + $0x50] sm:$0xff]  }
 0x190   :  { %808 = vmatprep.subr.bf16.mxu0 %v2568_v21  ;;  %v2658_v21 = vld [vmem:[%s3727_s25 + $0x58] sm:$0xff]  }
 0x193   :  { %809 = vmatpush1.bf16.msra.mxu0 %v2566_v23  ;;  %v2660_v23 = vld [vmem:[%s3727_s25 + $0x60] sm:$0xff]  }
 0x194   :  { %810 = vmatprep.subr.bf16.mxu0 %v2571_v24  ;;  %v2661_v24 = vld [vmem:[%s3727_s25 + $0x20] sm:$0xff]  }
 0x197   :  { %811 = vmatpush1.bf16.msra.mxu0 %v2569_v25  ;;  %v2662_v25 = vld [vmem:[%s3727_s25 + $0x68] sm:$0xff]  }
 0x198   :  { %812 = vmatprep.subr.bf16.mxu0 %v2574_v26  ;;  %v2663_v26 = vld [vmem:[%s3727_s25 + $0x28] sm:$0xff]  }
 0x19b   :  { %813 = vmatpush1.bf16.msra.mxu0 %v2572_v27  ;;  %v2664_v27 = vld [vmem:[%s3727_s25 + $0x70] sm:$0xff]  }
 0x19c   :  { %814 = vmatprep.subr.bf16.mxu0 %v2577_v28  ;;  %v2665_v28 = vld [vmem:[%s3727_s25 + $0x30] sm:$0xff]  }
 0x19f   :  { %815 = vmatpush1.bf16.msra.mxu0 %v2575_v29  ;;  %v2666_v29 = vld [vmem:[%s3727_s25 + $0x78] sm:$0xff]  }
 0x1a0   :  { %816 = vmatprep.subr.bf16.mxu0 %v2580_v30  ;;  %v2667_v30 = vld [vmem:[%s3727_s25 + $0x38] sm:$0xff]  }
 0x1a3   :  { %817 = vmatpush1.bf16.msra.mxu0 %v2578_v31  ;;  %v3046_v31 = vmov 0.0  }
 0x1a4   :  { %818 = vmatprep.subr.bf16.mxu0 %v2583_v32  ;;  %v912_v32 = vld [vmem:[#allocation9] sm:$0x3] }
 0x1a7   :  { %819 = vmatpush1.bf16.msra.mxu0 %v2581_v33  ;;  %v917_v33 = vrot.slane %v912_v32, %v333_v62 }
 0x1a8   :  { %829 = vmatprep.subr.bf16.mxu0 %v2588_v34  ;;  %v921_v34 = vrot.slane %v912_v32, %v337_v0 }
 0x1aa   :  { %821 = vmatmul.mubr.bf16.vlgmr.msra.gmra.mrb[0].mxu0 %v2073_v35 }
 0x1ab   :  { %830 = vmatpush1.bf16.msra.mxu0 %v2586_v36  ;;  %861 = vmatprep.mubr.bf16.mxu0 %v3044_v39  ;;  %v1128_v36 = vstv %s2185_s30 }
 0x1ac   :  { %831 = vmatprep.subr.bf16.mxu0 %v2591_v37 }
 0x1af   :  { %832 = vmatpush1.bf16.msra.mxu0 %v2589_v38 }
 0x1b0   :  { %833 = vmatprep.subr.bf16.mxu0 %v2594_v40 }
 0x1b3   :  { %834 = vmatpush1.bf16.msra.mxu0 %v2592_v41 }
 0x1b4   :  { %835 = vmatprep.subr.bf16.mxu0 %v2597_v42 }
 0x1b7   :  { %836 = vmatpush1.bf16.msra.mxu0 %v2595_v46 }
 0x1b8   :  { %837 = vmatprep.subr.bf16.mxu0 %v2600_v47  ;;  %v2668_v47 = vld [vmem:[#allocation12] sm:$0xff]  }
 0x1bb   :  { %838 = vmatpush1.bf16.msra.mxu0 %v2598_v50  ;;  %v2670_v50 = vld [vmem:[#allocation12 + $0x10] sm:$0xff]  }
 0x1bc   :  { %839 = vmatprep.subr.bf16.mxu0 %v745_v52  ;;  %v1357_v52 = vsel %vm1355_vm8, %v2671_v51, 0 }
 0x1bf   :  { %840 = vmatpush1.bf16.msra.mxu0 %v742_v53  ;;  %v1315_v53 = vld [vmem:[%s3728_s16] sm:$0xf] }
 0x1c0   :  { %2390 = vmatprep.subr.bf16.mxu0 %v3046_v31 }
 0x1c2   :  { %2152 = vmatmul.mubr.msk.bf16.vlgmr.msra.gmra.mrb[0].mxu0 %vm733_vm2, %v2603_v54  ;;  %v2672_v54 = vld [vmem:[%s3686_s10] sm:$0xff]   ;;  %s3729_s10 = sld [smem:[#allocation42_spill]]  ;;  %vm2057_vm2 = vcmask 7168  }
 0x1c3   :  { %2398 = vmatprep.mubr.msk.bf16.mxu0 %vm3047_vm5, %v3046_v31 }
 0x295   :  { %v863_v3 = vpop.f32.mrb[0].mxu0 }
 0x296   :  { %v2454_v5 = vadd.f32 %v863_v3, %v334_v1  ;;  %v865_v6 = vpop.f32.mrb[1].mxu0  ;;  %v2204_v3 = vld [vmem:[#allocation14] ss:$0 sm:$0xff] }
 0x297   :  { %v2455_v7 = vadd.f32 %v865_v6, %v338_v2  ;;  %v867_v8 = vpop.f32.mrb[2].mxu0 }
 0x298   :  { %vm871_vm3 = vcmp.ge.f32.partialorder %v2454_v5, 0.0  ;;  %v874_v9 = vmul.f32 %v2454_v5, %v873_v4  ;;  %v868_v10 = vpop.f32.mrb[3].mxu0 }
 0x299   :  { %vm872_vm4 = vcmp.ge.f32.partialorder %v2455_v7, 0.0  ;;  %v875_v11 = vmul.f32 %v2455_v7, %v873_v4 }
 0x29a   :  { %v876_v12 = vsel %vm871_vm3, %v2454_v5, %v874_v9  ;;  %v1401_v5 = vstv %s2210_s29 }
 0x29b   :  { %v877_v13 = vsel %vm872_vm4, %v2455_v7, %v875_v11  ;;  %v878_v16 = vpack.c.bf16 %v876_v12, %v876_v12  ;;  %v2680_v12 = vld [vmem:[%s3688_s12] sm:$0xff]  }
 0x29c   :  { %v879_v14 = vpack.c.bf16 %v877_v13, %v877_v13 }
 0x29e   :  { %1116 = vmatprep.mubr.bf16.mxu1 %v879_v14  ;;  %v2681_v14 = vld [vmem:[%s3688_s12 + $0x8] sm:$0xff]  }
 0x29f   :  { %1117 = vmatmul.mubr.bf16.vlgmr.msra.gmra.mrb[0].mxu1 %v878_v16  ;;  %v2683_v16 = vld [vmem:[%s3688_s12 + $0x18] sm:$0xff]  }
 0x2a0   :  { %2266 = vmatpush3.bf16.msra.mxu1 %v2653_v15  ;;  %v2682_v15 = vld [vmem:[%s3688_s12 + $0x10] sm:$0xff]  }
 0x2a1   :  { %2267 = vmatprep.subr.bf16.mxu1 %v2654_v17  ;;  %v2684_v17 = vld [vmem:[%s3688_s12 + $0x20] sm:$0xff]  }
 0x2a4   :  { %2268 = vmatpush3.bf16.msra.mxu1 %v2655_v18  ;;  %v2685_v18 = vld [vmem:[%s3688_s12 + $0x28] sm:$0xff]  }
 0x2a5   :  { %2269 = vmatprep.subr.bf16.mxu1 %v2656_v19  ;;  %v2686_v19 = vld [vmem:[%s3688_s12 + $0x30] sm:$0xff]  }
 0x2a8   :  { %2270 = vmatpush3.bf16.msra.mxu1 %v2657_v20  ;;  %v2687_v20 = vld [vmem:[%s3688_s12 + $0x38] sm:$0xff]  }
 0x2a9   :  { %2271 = vmatprep.subr.bf16.mxu1 %v2658_v21  ;;  %v2688_v21 = vld [vmem:[#allocation20] sm:$0xff]  }
 0x2aa   :  { %2391 = vmatpush3.bf16.msra.mxu0 %v2688_v21  ;;  %v2710_v21 = vld [vmem:[%s3695_s19 + $0x30] sm:$0xff]  }
 0x2ab   :  { %2392 = vmatprep.subr.bf16.mxu0 %v3046_v31 }
 0x2ac   :  { %2272 = vmatpush3.bf16.msra.mxu1 %v2659_v22  ;;  %v2689_v22 = vld [vmem:[#allocation20 + $0x8] sm:$0xff]  }
 0x2ad   :  { %2273 = vmatprep.subr.bf16.mxu1 %v2660_v23  ;;  %v2211_v23 = vld [vmem:[#allocation15] ss:$0 sm:$0xff] }
 0x2ae   :  { %2393 = vmatpush3.bf16.msra.mxu0 %v2689_v22  ;;  %v2711_v22 = vld [vmem:[%s3695_s19 + $0x38] sm:$0xff]  }
 0x2af   :  { %2394 = vmatprep.subr.bf16.mxu0 %v3046_v31 }
 0x2b0   :  { %2274 = vmatpush3.bf16.msra.mxu1 %v2661_v24 }
 0x2b1   :  { %2275 = vmatprep.subr.bf16.mxu1 %v2662_v25  ;;  %v1518_v25 = vstv %s2220_s13 }
 0x2b4   :  { %2276 = vmatpush3.bf16.msra.mxu1 %v2663_v26 }
 0x2b5   :  { %2277 = vmatprep.subr.bf16.mxu1 %v2664_v27 }
 0x2b8   :  { %2278 = vmatpush3.bf16.msra.mxu1 %v2665_v28 }
 0x2b9   :  { %2279 = vmatprep.subr.bf16.mxu1 %v2666_v29 }
 0x2bc   :  { %2280 = vmatpush3.bf16.msra.mxu1 %v2667_v30 }
 0x2bd   :  { %2338 = vmatprep.subr.bf16.mxu1 %v3046_v31 }
 0x372   :  { %v1118_v35 = vpop.f32.mrb[0].mxu1 }
 0x373   :  { %v1119_v37 = vadd.f32 %v1118_v35, %v917_v33  ;;  %v1120_v38 = vpop.f32.mrb[1].mxu1  ;;  %v2691_v35 = vld [vmem:[#allocation20 + $0x18] sm:$0xff]  }
 0x374   :  { %v1121_v39 = vadd.f32 %v1120_v38, %v921_v34  ;;  %v1122_v40 = vpop.f32.mrb[2].mxu1  ;;  %v2690_v34 = vld [vmem:[#allocation20 + $0x10] sm:$0xff]   ;;  %v2221_v38 = vld [vmem:[#allocation17] ss:$0 sm:$0xff] }
 0x375   :  { %vm1126_vm6 = vcmp.ge.f32.partialorder %v1119_v37, 0.0  ;;  %v1129_v41 = vmul.f32 %v1128_v36, %v1119_v37  ;;  %v1123_v42 = vpop.f32.mrb[3].mxu1  ;;  %2395 = vmatpush3.bf16.msra.mxu0 %v2690_v34  ;;  %v1635_v40 = vstv %s2230_s7 }
 0x376   :  { %vm1127_vm7 = vcmp.ge.f32.partialorder %v1121_v39, 0.0  ;;  %v1130_v44 = vmul.f32 %v1128_v36, %v1121_v39  ;;  %2396 = vmatprep.subr.bf16.mxu0 %v3046_v31  ;;  %v2696_v36 = vld [vmem:[%s3693_s17] sm:$0xff]  }
 0x377   :  { %v1131_v45 = vsel %vm1126_vm6, %v1119_v37, %v1129_v41  ;;  %v2697_v37 = vld [vmem:[%s3693_s17 + $0x8] sm:$0xff]  }
 0x378   :  { %v1132_v43 = vsel %vm1127_vm7, %v1121_v39, %v1130_v44  ;;  %v1133_v48 = vpack.c.bf16 %v1131_v45, %v1131_v45 }
 0x379   :  { %v1134_v46 = vpack.c.bf16 %v1132_v43, %v1132_v43  ;;  %2397 = vmatpush3.bf16.msra.mxu0 %v2691_v35  ;;  %v2035_v35 = vstv %s2262_s3 }
 0x37a   :  { %2402 = vmatprep.subr.bf16.mxu0 %v3046_v31 }
 0x37b   :  { %1302 = vmatprep.mubr.bf16.mxu1 %v1134_v46 }
 0x37c   :  { %1303 = vmatmul.mubr.bf16.vlgmr.msra.gmra.mrb[4].mxu1 %v1133_v48 }
 0x37d   :  { %2339 = vmatpush3.bf16.msra.mxu1 %v2668_v47  ;;  %2346 = vmatprep.mubr.msk.bf16.mxu1 %vm3047_vm5, %v3046_v31  ;;  %v2692_v47 = vld [vmem:[#allocation18] sm:$0xff]  }
 0x37e   :  { %2340 = vmatprep.subr.bf16.mxu1 %v3046_v31 }
 0x381   :  { %2341 = vmatpush3.bf16.msra.mxu1 %v2669_v49  ;;  %v2186_v49 = vld [vmem:[#allocation11] ss:$0 sm:$0xff] }
 0x382   :  { %2342 = vmatprep.subr.bf16.mxu1 %v3046_v31 }
 0x385   :  { %2343 = vmatpush3.bf16.msra.mxu1 %v2670_v50  ;;  %v2693_v50 = vld [vmem:[#allocation18 + $0x8] sm:$0xff]  }
 0x386   :  { %2344 = vmatprep.subr.bf16.mxu1 %v3046_v31 }
 0x389   :  { %2345 = vmatpush3.bf16.msra.mxu1 %v1357_v52  ;;  %v1312_v52 = vstv %s2203_s28 }
 0x38a   :  { %2350 = vmatprep.subr.bf16.mxu1 %v3046_v31 }
 0x38c   :  { %2347 = vmatmul.mubr.msk.bf16.vlgmr.msra.gmra.mrb[8].mxu1 %vm1351_vm9, %v1315_v53  ;;  %v2694_v53 = vld [vmem:[#allocation18 + $0x10] sm:$0xff]  }
 0x38d   :  { %2351 = vmatpush3.bf16.msra.mxu1 %v2672_v54  ;;  %2366 = vmatprep.mubr.msk.bf16.mxu1 %vm3047_vm5, %v3046_v31 }
 0x38e   :  { %2352 = vmatprep.subr.bf16.mxu1 %v3046_v31 }
 0x391   :  { %2353 = vmatpush3.bf16.msra.mxu1 %v2673_v55  ;;  %v2695_v55 = vld [vmem:[#allocation18 + $0x18] sm:$0xff]  }
 0x392   :  { %2354 = vmatprep.subr.bf16.mxu1 %v3046_v31 }
 0x395   :  { %2355 = vmatpush3.bf16.msra.mxu1 %v2674_v56 }
 0x396   :  { %2356 = vmatprep.subr.bf16.mxu1 %v3046_v31 }
 0x399   :  { %2357 = vmatpush3.bf16.msra.mxu1 %v2675_v57 }
 0x39a   :  { %2358 = vmatprep.subr.bf16.mxu1 %v3046_v31 }
 0x39d   :  { %2359 = vmatpush3.bf16.msra.mxu1 %v2676_v58  ;;  %v2698_v58 = vld [vmem:[%s3693_s17 + $0x10] sm:$0xff]  }
 0x39e   :  { %2360 = vmatprep.subr.bf16.mxu1 %v3046_v31 }
 0x3a1   :  { %2361 = vmatpush3.bf16.msra.mxu1 %v2677_v59  ;;  %v2699_v59 = vld [vmem:[%s3693_s17 + $0x18] sm:$0xff]  }
 0x3a2   :  { %2362 = vmatprep.subr.bf16.mxu1 %v3046_v31 }
 0x3a5   :  { %2363 = vmatpush3.bf16.msra.mxu1 %v2678_v60  ;;  %v2700_v60 = vld [vmem:[%s3693_s17 + $0x20] sm:$0xff]  }
 0x3a6   :  { %2364 = vmatprep.subr.bf16.mxu1 %v3046_v31 }
 0x3a9   :  { %2365 = vmatpush3.bf16.msra.mxu1 %v2679_v61  ;;  %v2701_v61 = vld [vmem:[%s3693_s17 + $0x28] sm:$0xff]  }
 0x3aa   :  { %2370 = vmatprep.subr.bf16.mxu1 %v3046_v31 }
 0x44f   :  { %v2281_v62 = vpop.f32.mrb[4].mxu1 }
 0x450   :  { %v2282_v63 = vpop.f32.mrb[5].mxu1 }
 0x451   :  { %v3551_v0 = vadd.f32 %v2282_v63, %v2281_v62  ;;  %v2284_v1 = vpop.f32.mrb[6].mxu1  ;;  %v2702_v62 = vld [vmem:[%s3693_s17 + $0x30] sm:$0xff]   ;;  %v2703_v63 = vld [vmem:[%s3693_s17 + $0x38] sm:$0xff]  }
 0x452   :  { %v2285_v2 = vpop.f32.mrb[7].mxu1  ;;  %v2705_v1 = vld [vmem:[%s3695_s19 + $0x8] sm:$0xff]  }
 0x453   :  { %v1305_v51 = vadd.f32 %v3551_v0, %v2186_v49  ;;  %v2704_v0 = vld [vmem:[%s3695_s19] sm:$0xff]   ;;  %v2706_v2 = vld [vmem:[%s3695_s19 + $0x10] sm:$0xff]  }
 0x455   :  { %v1313_v54 = vmul.f32 %v1312_v52, %v1305_v51  ;;  %vm1311_vm14 = vcmp.ge.f32.partialorder %v1305_v51, 0.0 }
 0x457   :  { %v1314_v56 = vsel %vm1311_vm14, %v1305_v51, %v1313_v54 }
 0x458   :  { %v1638_v57 = vpack.c.bf16 %v1314_v56, %v1314_v56 }
 0x45f   :  { %v1393_v4 = vpop.f32.mrb[8].mxu1 }
 0x460   :  { %v1394_v6 = vadd.f32 %v2204_v3, %v1393_v4  ;;  %v2348_v7 = vpop.f32.mrb[9].mxu1  ;;  %v2707_v3 = vld [vmem:[%s3695_s19 + $0x18] sm:$0xff]   ;;  %v2708_v4 = vld [vmem:[%s3695_s19 + $0x20] sm:$0xff]  }
 0x461   :  { %v1396_v8 = vpop.f32.mrb[10].mxu1 }
 0x462   :  { %vm1400_vm10 = vcmp.ge.f32.partialorder %v1394_v6, 0.0  ;;  %v1402_v9 = vmul.f32 %v1401_v5, %v1394_v6  ;;  %v2349_v10 = vpop.f32.mrb[11].mxu1  ;;  %v2709_v5 = vld [vmem:[%s3695_s19 + $0x28] sm:$0xff]  }
 0x464   :  { %v1403_v11 = vsel %vm1400_vm10, %v1394_v6, %v1402_v9 }
 0x465   :  { %v1404_v13 = vpack.c.bf16 %v1403_v11, %v1403_v11  ;;  %v2241_v11 = vld [vmem:[#allocation21] ss:$0 sm:$0xff] }
 0x467   :  { %2367 = vmatmul.mubr.bf16.vlgmr.msra.gmra.mrb[12].mxu1 %v1404_v13 }
 0x468   :  { %2371 = vmatpush3.bf16.msra.mxu1 %v2680_v12  ;;  %2386 = vmatprep.mubr.msk.bf16.mxu1 %vm3047_vm5, %v3046_v31 }
 0x469   :  { %2372 = vmatprep.subr.bf16.mxu1 %v3046_v31 }
 0x46c   :  { %2373 = vmatpush3.bf16.msra.mxu1 %v2681_v14  ;;  %v1801_v14 = vstv %s2242_s5 }
 0x46d   :  { %2374 = vmatprep.subr.bf16.mxu1 %v3046_v31 }
 0x470   :  { %2375 = vmatpush3.bf16.msra.mxu1 %v2682_v15 }
 0x471   :  { %2376 = vmatprep.subr.bf16.mxu1 %v3046_v31 }
 0x474   :  { %2377 = vmatpush3.bf16.msra.mxu1 %v2683_v16 }
 0x475   :  { %2378 = vmatprep.subr.bf16.mxu1 %v3046_v31 }
 0x478   :  { %2379 = vmatpush3.bf16.msra.mxu1 %v2684_v17 }
 0x479   :  { %2380 = vmatprep.subr.bf16.mxu1 %v3046_v31 }
 0x47c   :  { %2381 = vmatpush3.bf16.msra.mxu1 %v2685_v18 }
 0x47d   :  { %2382 = vmatprep.subr.bf16.mxu1 %v3046_v31 }
 0x480   :  { %2383 = vmatpush3.bf16.msra.mxu1 %v2686_v19 }
 0x481   :  { %2384 = vmatprep.subr.bf16.mxu1 %v3046_v31 }
 0x484   :  { %2385 = vmatpush3.bf16.msra.mxu1 %v2687_v20 }
 0x485   :  { %2414 = vmatprep.subr.bf16.mxu1 %v3046_v31 }
 0x53a   :  { %v1510_v24 = vpop.f32.mrb[12].mxu1 }
 0x53b   :  { %v1511_v26 = vadd.f32 %v2211_v23, %v1510_v24  ;;  %v2368_v27 = vpop.f32.mrb[13].mxu1  ;;  %v2243_v23 = vld [vmem:[#allocation23] ss:$0 sm:$0xff] }
 0x53c   :  { %v1513_v28 = vpop.f32.mrb[14].mxu1 }
 0x53d   :  { %vm1517_vm11 = vcmp.ge.f32.partialorder %v1511_v26, 0.0  ;;  %v1519_v29 = vmul.f32 %v1518_v25, %v1511_v26  ;;  %v2369_v30 = vpop.f32.mrb[15].mxu1  ;;  %v1918_v25 = vstv %s2252_s22 }
 0x53f   :  { %v1520_v32 = vsel %vm1517_vm11, %v1511_v26, %v1519_v29 }
 0x540   :  { %v1521_v33 = vpack.c.bf16 %v1520_v32, %v1520_v32 }
 0x542   :  { %2387 = vmatmul.mubr.bf16.vlgmr.msra.gmra.mrb[16].mxu1 %v1521_v33 }
 0x543   :  { %2430 = vmatprep.mubr.msk.bf16.mxu1 %vm3047_vm5, %v3046_v31  ;;  %2415 = vmatpush3.bf16.msra.mxu1 %v2696_v36 }
 0x544   :  { %2416 = vmatprep.subr.bf16.mxu1 %v3046_v31 }
 0x547   :  { %2417 = vmatpush3.bf16.msra.mxu1 %v2697_v37 }
 0x548   :  { %2418 = vmatprep.subr.bf16.mxu1 %v3046_v31 }
 0x54b   :  { %2419 = vmatpush3.bf16.msra.mxu1 %v2698_v58 }
 0x54c   :  { %2420 = vmatprep.subr.bf16.mxu1 %v3046_v31 }
 0x54f   :  { %2421 = vmatpush3.bf16.msra.mxu1 %v2699_v59 }
 0x550   :  { %2422 = vmatprep.subr.bf16.mxu1 %v3046_v31 }
 0x553   :  { %2423 = vmatpush3.bf16.msra.mxu1 %v2700_v60 }
 0x554   :  { %2424 = vmatprep.subr.bf16.mxu1 %v3046_v31 }
 0x557   :  { %2425 = vmatpush3.bf16.msra.mxu1 %v2701_v61 }
 0x558   :  { %2426 = vmatprep.subr.bf16.mxu1 %v3046_v31 }
 0x55b   :  { %2427 = vmatpush3.bf16.msra.mxu1 %v2702_v62 }
 0x55c   :  { %2428 = vmatprep.subr.bf16.mxu1 %v3046_v31 }
 0x55f   :  { %2429 = vmatpush3.bf16.msra.mxu1 %v2703_v63 }
 0x615   :  { %v1627_v39 = vpop.f32.mrb[16].mxu1 }
 0x616   :  { %v1628_v41 = vadd.f32 %v2221_v38, %v1627_v39  ;;  %v2388_v42 = vpop.f32.mrb[17].mxu1 }
 0x617   :  { %v1630_v44 = vpop.f32.mrb[18].mxu1 }
 0x618   :  { %vm1634_vm12 = vcmp.ge.f32.partialorder %v1628_v41, 0.0  ;;  %v1636_v45 = vmul.f32 %v1635_v40, %v1628_v41  ;;  %v2389_v43 = vpop.f32.mrb[19].mxu1 }
 0x619   :  { %v2264_v43 = vld [vmem:[#allocation2] ss:$0 sm:$0xff] }
 0x61a   :  { %v1637_v46 = vsel %vm1634_vm12, %v1628_v41, %v1636_v45  ;;  %v2263_v41 = vld [vmem:[%s3729_s10] ss:$0 sm:$0xff] }
 0x61b   :  { %v1647_v48 = vpack.c.bf16 %v1637_v46, %v1637_v46 }
 0x61d   :  { %2399 = vmatmul.mubr.msk.bf16.vlgmr.msra.gmra.mrb[4].mxu0 %vm1680_vm13, %v1647_v48 }
 0x61e   :  { %2403 = vmatpush3.bf16.msra.mxu0 %v2692_v47  ;;  %2410 = vmatprep.mubr.msk.bf16.mxu0 %vm3047_vm5, %v3046_v31 }
 0x61f   :  { %2404 = vmatprep.subr.bf16.mxu0 %v3046_v31 }
 0x622   :  { %2405 = vmatpush3.bf16.msra.mxu0 %v2693_v50 }
 0x623   :  { %2406 = vmatprep.subr.bf16.mxu0 %v3046_v31 }
 0x626   :  { %2407 = vmatpush3.bf16.msra.mxu0 %v2694_v53 }
 0x627   :  { %2408 = vmatprep.subr.bf16.mxu0 %v3046_v31 }
 0x62a   :  { %2409 = vmatpush3.bf16.msra.mxu0 %v2695_v55 }
 0x62b   :  { %2434 = vmatprep.subr.bf16.mxu0 %v3046_v31 }
 0x62d   :  { %2411 = vmatmul.mubr.msk.bf16.vlgmr.msra.gmra.mrb[8].mxu0 %vm1680_vm13, %v1638_v57 }
 0x62e   :  { %2450 = vmatprep.mubr.msk.bf16.mxu0 %vm3047_vm5, %v3046_v31  ;;  %2435 = vmatpush3.bf16.msra.mxu0 %v2704_v0 }
 0x62f   :  { %2436 = vmatprep.subr.bf16.mxu0 %v3046_v31 }
 0x632   :  { %2437 = vmatpush3.bf16.msra.mxu0 %v2705_v1 }
 0x633   :  { %2438 = vmatprep.subr.bf16.mxu0 %v3046_v31 }
 0x636   :  { %2439 = vmatpush3.bf16.msra.mxu0 %v2706_v2 }
 0x637   :  { %2440 = vmatprep.subr.bf16.mxu0 %v3046_v31 }
 0x63a   :  { %2441 = vmatpush3.bf16.msra.mxu0 %v2707_v3 }
 0x63b   :  { %2442 = vmatprep.subr.bf16.mxu0 %v3046_v31 }
 0x63e   :  { %2443 = vmatpush3.bf16.msra.mxu0 %v2708_v4 }
 0x63f   :  { %2444 = vmatprep.subr.bf16.mxu0 %v3046_v31 }
 0x642   :  { %2445 = vmatpush3.bf16.msra.mxu0 %v2709_v5 }
 0x643   :  { %2446 = vmatprep.subr.bf16.mxu0 %v3046_v31 }
 0x646   :  { %2447 = vmatpush3.bf16.msra.mxu0 %v2710_v21 }
 0x647   :  { %2448 = vmatprep.subr.bf16.mxu0 %v3046_v31  ;;  %v2253_v31 = vld [vmem:[%s3696_s20] ss:$0 sm:$0xff] }
 0x64a   :  { %2449 = vmatpush3.bf16.msra.mxu0 %v2711_v22 }
 0x6f0   :  { %v1718_v6 = vpop.f32.mrb[4].mxu0 }
 0x6f1   :  { %v2400_v7 = vpop.f32.mrb[5].mxu0 }
 0x6f2   :  { %v1721_v8 = vpop.f32.mrb[6].mxu0 }
 0x6f3   :  { %v2401_v9 = vpop.f32.mrb[7].mxu0 }
 0x700   :  { %v1785_v10 = vpop.f32.mrb[8].mxu0 }
 0x701   :  { %v1786_v12 = vadd.f32 %v1785_v10, %v1718_v6  ;;  %v2412_v13 = vpop.f32.mrb[9].mxu0 }
 0x702   :  { %v1788_v15 = vpop.f32.mrb[10].mxu0 }
 0x703   :  { %v1798_v16 = vadd.f32 %v2241_v11, %v1786_v12  ;;  %v2413_v17 = vpop.f32.mrb[11].mxu0 }
 0x705   :  { %vm1800_vm15 = vcmp.ge.f32.partialorder %v1798_v16, 0.0  ;;  %v1802_v18 = vmul.f32 %v1801_v14, %v1798_v16 }
 0x707   :  { %v1803_v19 = vsel %vm1800_vm15, %v1798_v16, %v1802_v18 }
 0x708   :  { %v1804_v20 = vpack.c.bf16 %v1803_v19, %v1803_v19 }
 0x70a   :  { %2431 = vmatmul.mubr.bf16.vlgmr.msra.gmra.mrb[20].mxu1 %v1804_v20 }
 0x7dd   :  { %v1910_v24 = vpop.f32.mrb[20].mxu1 }
 0x7de   :  { %v1911_v26 = vadd.f32 %v2243_v23, %v1910_v24  ;;  %v2432_v27 = vpop.f32.mrb[21].mxu1 }
 0x7df   :  { %v1913_v28 = vpop.f32.mrb[22].mxu1 }
 0x7e0   :  { %vm1917_vm0 = vcmp.ge.f32.partialorder %v1911_v26, 0.0  ;;  %v1919_v29 = vmul.f32 %v1918_v25, %v1911_v26  ;;  %v2433_v30 = vpop.f32.mrb[23].mxu1 }
 0x7e2   :  { %v1920_v32 = vsel %vm1917_vm0, %v1911_v26, %v1919_v29 }
 0x7e3   :  { %v1921_v33 = vpack.c.bf16 %v1920_v32, %v1920_v32 }
 0x7e5   :  { %2451 = vmatmul.mubr.bf16.vlgmr.msra.gmra.mrb[12].mxu0 %v1921_v33 }
 0x8b8   :  { %v2027_v34 = vpop.f32.mrb[12].mxu0 }
 0x8b9   :  { %v2028_v36 = vadd.f32 %v2253_v31, %v2027_v34  ;;  %v2452_v37 = vpop.f32.mrb[13].mxu0 }
 0x8ba   :  { %v2030_v38 = vpop.f32.mrb[14].mxu0 }
 0x8bb   :  { %v2036_v39 = vmul.f32 %v2035_v35, %v2028_v36  ;;  %v2453_v40 = vpop.f32.mrb[15].mxu0  ;;  %vm2034_vm1 = vcmp.ge.f32.partialorder %v2028_v36, 0.0 }
 0x8bd   :  { %v2037_v42 = vsel %vm2034_vm1, %v2028_v36, %v2036_v39 }
 0x8be   :  { %v2045_v44 = vmul.f32 %v2263_v41, %v2037_v42 }
 0x8c0   :  { %v2046_v45 = vsel %vm1680_vm13, %v2045_v44, 0.0 }
 0x8c1   :  { %2047 = vadd.xlane.f32.xlu0 %v2046_v45 }
 0x94e   :  { %v2048_v46 = vpop.xlane.xlu0 %2047 }
 0x94f   :  { %v2056_v47 = vadd.f32 %v2264_v43, %v2048_v46 }
 0x951   :  { %2058 = vst.msk [vmem:[%s3730_s14] sm:$0xff] %vm2057_vm2, %v2056_v47 }
 0x952   :  { %2063 = vsyncpa [#allocation4], 1 }
 0x953   :  { %2064 = vsyncpa [#allocation7], 1 }
 0x954   :  { %2065 = vsyncpa [#allocation10], 1 }
 0x955   :  { %2066 = vsyncpa [#allocation13], 1 }
 0x956   :  { %2067 = vsyncpa [#allocation16], 1 }
 0x957   :  { %2068 = vsyncpa [#allocation19], 1 }
 0x958   :  { %2069 = vsyncpa [#allocation22], 1 }
 0x959   :  { %2070 = vsyncpa [#allocation5], 1 }

</bundles_post_ra>
